<compile_context>
chip_gen: v6e
topology: v6e:2x2x1
jax: 0.10.0
libtpu: 0.0.40
codegen_flags: <defaults>
</compile_context>

<pallas_src>
import functools

import jax
import jax.numpy as jnp
import numpy as np
from jax.experimental import pallas as pl
from jax.experimental.pallas import tpu as pltpu  # noqa: F401  (TPU backend)

# ---- small config (consistent with the module's structure) ----
DIM = 128          # model dim
N_HEAD = 4
QK_NOPE = 16
QK_ROPE = 8
QK_HEAD = QK_NOPE + QK_ROPE   # 24
V_HEAD = 16
KV_LORA = 64
INTER = 256        # MLP inter dim
EPS = 1e-6
B, N = 2, 8        # batch, seq
NEG_INF = -1e9     # additive mask fill (f32)
MXU_DTYPE = jnp.float32   # set jnp.bfloat16 on v6e/v7x at production sizes


# ----------------------------------------------------------------------------
# Fused Block kernel (single pallas_call, no grid)
# ----------------------------------------------------------------------------

def _block_kernel(x_ref, wqkva_ref, wkvb_ref, wo_ref, w13_ref, w2_ref,
                  anw_ref, mnw_ref, knw_ref,
                  cos_ref, sin_ref, mask_ref, o_ref,
                  *, n_head, qk_nope, qk_rope, v_head, n_q, inter,
                  scale, eps, mxu_dtype):
    f32 = jnp.float32
    half = qk_rope // 2

    def rms(v, w):
        ms = jnp.mean(v * v, axis=-1, keepdims=True)
        return v * jax.lax.rsqrt(ms + eps) * w

    def dot(a, b):
        return jnp.dot(a.astype(mxu_dtype), b.astype(mxu_dtype),
                       preferred_element_type=f32)

    def dot_nt(a, b):  # a @ b.T without materializing a transpose
        return jax.lax.dot_general(a.astype(mxu_dtype), b.astype(mxu_dtype),
                                   (((1,), (1,)), ((), ())),
                                   preferred_element_type=f32)

    x = x_ref[...].astype(f32)                       # (M, D)
    xn = rms(x, anw_ref[...])

    # Fused q | kv_a projection.
    #   columns: [ q-nope per head (H*16) | q-rope-even (H*4) | q-rope-odd (H*4)
    #            | k-rope-even (4) | k-rope-odd (4) | kv_lora (64) ]
    qkva = dot(xn, wqkva_ref[...])                   # (M, 168)
    q = qkva[:, :n_q]                                # (M, 96)
    kva = qkva[:, n_q:]                              # (M, 72)

    cos_h = cos_ref[...]                             # (M, H*half) cos tiled over heads
    sin_h = sin_ref[...]
    cos1 = cos_h[:, :half]                           # (M, half) per-position cos
    sin1 = sin_h[:, :half]

    # RoPE: all q heads at once + shared k_rope (pure VPU).
    nh_np = n_head * qk_nope
    qe = q[:, nh_np:nh_np + n_head * half]
    qo = q[:, nh_np + n_head * half:]
    qre = qe * cos_h - qo * sin_h                    # (M, H*half)
    qro = qe * sin_h + qo * cos_h

    ke = kva[:, :half]
    ko = kva[:, half:qk_rope]
    kre = ke * cos1 - ko * sin1                      # (M, half), shared across heads
    kro = ke * sin1 + ko * cos1
    k_rope = jnp.concatenate([kre, kro], axis=1)     # (M, qk_rope)

    # Low-rank KV path. wkv_b columns: [k_nope per head (H*16) | v per head (H*16)]
    kvn = rms(kva[:, qk_rope:], knw_ref[...])        # (M, KV_LORA)
    kvb = dot(kvn, wkvb_ref[...])                    # (M, H*(nope+v))
    kn_all = kvb[:, :n_head * qk_nope]
    v_all = kvb[:, n_head * qk_nope:]

    mask = mask_ref[...]                             # (M, M) block-diag causal (additive)

    # Attention: static unrolled loop over heads; both batches packed via the
    # block-diagonal mask. One score matmul per head; wo projection deferred.
    ctx = []
    for h in range(n_head):
        q_h = jnp.concatenate(
            [q[:, h * qk_nope:(h + 1) * qk_nope],
             qre[:, h * half:(h + 1) * half],
             qro[:, h * half:(h + 1) * half]], axis=1)       # (M, 24)
        k_h = jnp.concatenate(
            [kn_all[:, h * qk_nope:(h + 1) * qk_nope], k_rope], axis=1)  # (M, 24)
        s = dot_nt(q_h, k_h) * scale + mask
        m = jnp.max(s, axis=-1, keepdims=True)
        p = jnp.exp(s - m)
        l = jnp.sum(p, axis=-1, keepdims=True)
        # EUP reciprocal (~1e-3 rel err) is within the 2e-3 tolerance; use exact
        # division if tolerances tighten or operands move to bf16.
        p = p * pl.reciprocal(l, approx=True)
        ctx.append(dot(p, v_all[:, h * v_head:(h + 1) * v_head]))  # (M, V_HEAD)
    ctx = jnp.concatenate(ctx, axis=1)               # (M, H*V_HEAD)
    attn = dot(ctx, wo_ref[...])                     # single contraction-64 matmul

    # Residual + RMSNorm + fused SwiGLU MLP + residual, all in VMEM.
    x1 = x + attn
    hn = rms(x1, mnw_ref[...])
    h13 = dot(hn, w13_ref[...])                      # (M, 2*inter), fused w1|w3
    h1 = h13[:, :inter]
    h3 = h13[:, inter:]
    g = h1 * jax.nn.sigmoid(h1) * h3                 # silu(h1) * h3
    y = dot(g, w2_ref[...])
    o_ref[...] = (x1 + y).astype(o_ref.dtype)


# ---- weight column permutations (pure re-layout; math-equivalent) ----

def _rope_perm_q(n_head, qk_nope, qk_rope):
    half = qk_rope // 2
    qk_head = qk_nope + qk_rope
    perm = []
    for h in range(n_head):
        perm += [h * qk_head + i for i in range(qk_nope)]
    for h in range(n_head):
        perm += [h * qk_head + qk_nope + 2 * i for i in range(half)]
    for h in range(n_head):
        perm += [h * qk_head + qk_nope + 2 * i + 1 for i in range(half)]
    return np.asarray(perm, np.int32)


def _rope_perm_kva(qk_rope, kv_lora):
    half = qk_rope // 2
    perm = ([2 * i for i in range(half)] + [2 * i + 1 for i in range(half)]
            + list(range(qk_rope, qk_rope + kv_lora)))
    return np.asarray(perm, np.int32)


def _perm_kvb(n_head, qk_nope, v_head):
    hd = qk_nope + v_head
    perm = ([h * hd + i for h in range(n_head) for i in range(qk_nope)]
            + [h * hd + qk_nope + i for h in range(n_head) for i in range(v_head)])
    return np.asarray(perm, np.int32)


# ----------------------------------------------------------------------------
# One-time host-side prep (hoisted out of the per-call forward path)
# ----------------------------------------------------------------------------

def prepare_block(p, cos, sin, mask, batch, seq):
    """Compute fused / re-laid-out weights, head-tiled rope tables and the packed
    block-diagonal mask ONCE (e.g. at parameter-init time)."""
    M = batch * seq
    wq = p['wq'][:, _rope_perm_q(N_HEAD, QK_NOPE, QK_ROPE)]
    wkva = p['wkv_a'][:, _rope_perm_kva(QK_ROPE, KV_LORA)]
    wkvb = p['wkv_b'][:, _perm_kvb(N_HEAD, QK_NOPE, V_HEAD)]

    w_qkva = jnp.concatenate([wq, wkva], axis=1)            # (D, 168)
    w13 = jnp.concatenate([p['w1'], p['w3']], axis=1)       # (D, 2*INTER)

    # Per-(b, n) row cos/sin, tiled across heads -> (M, N_HEAD * QK_ROPE//2).
    cos_h = jnp.tile(jnp.tile(cos, (batch, 1)), (1, N_HEAD))
    sin_h = jnp.tile(jnp.tile(sin, (batch, 1)), (1, N_HEAD))

    # Pack all batches into one attention problem via a block-diagonal mask.
    # (At large M, compute this in-kernel from broadcasted_iota instead.)
    rb = jnp.arange(M) // seq
    same = rb[:, None] == rb[None, :]
    big_mask = jnp.where(same, jnp.tile(mask, (batch, batch)),
                         jnp.float32(NEG_INF)).astype(jnp.float32)

    prepped = dict(
        w_qkva=w_qkva, wkvb=wkvb, wo=p['wo'], w13=w13, w2=p['w2'],
        anw=p['attn_norm_w'].reshape(1, DIM),
        mnw=p['mlp_norm_w'].reshape(1, DIM),
        knw=p['kv_norm_w'].reshape(1, KV_LORA),
        cos_h=cos_h, sin_h=sin_h, mask=big_mask)
    return jax.tree_util.tree_map(jax.block_until_ready, prepped)


@jax.jit
def block_forward(prepped, x):
    """x: (B, N, DIM). Returns (out, aux_loss)."""
    Bb, Nn, D = x.shape
    M = Bb * Nn

    kernel = functools.partial(
        _block_kernel, n_head=N_HEAD, qk_nope=QK_NOPE, qk_rope=QK_ROPE,
        v_head=V_HEAD, n_q=N_HEAD * QK_HEAD, inter=INTER,
        scale=QK_HEAD ** -0.5, eps=EPS, mxu_dtype=MXU_DTYPE)

    out2 = pl.pallas_call(
        kernel,
        out_shape=jax.ShapeDtypeStruct((M, D), jnp.float32),
    )(x.reshape(M, D), prepped['w_qkva'], prepped['wkvb'], prepped['wo'],
      prepped['w13'], prepped['w2'], prepped['anw'], prepped['mnw'],
      prepped['knw'], prepped['cos_h'], prepped['sin_h'], prepped['mask'])

    return out2.reshape(Bb, Nn, D), 0.0               # MLP branch: aux_loss = 0.0


# ----------------------------------------------------------------------------
# Pure-JAX reference (no Pallas) for validation — interleaved rope, per-batch mask
# ----------------------------------------------------------------------------

def apply_rope(x, cos, sin):
    """x: (B, N, H, R); cos/sin: (N, R//2). Matches torch.view_as_complex pairing."""
    xe = x[..., 0::2]
    xo = x[..., 1::2]
    c = cos[None, :, None, :]
    s = sin[None, :, None, :]
    ye = xe * c - xo * s
    yo = xe * s + xo * c
    return jnp.stack([ye, yo], axis=-1).reshape(x.shape)


def _rms_ref(x, w, eps=EPS):
    ms = jnp.mean(x * x, axis=-1, keepdims=True)
    return x * jax.lax.rsqrt(ms + eps) * w


def block_reference(p, x, cos, sin, mask):
    Bb, Nn, D = x.shape
    h = _rms_ref(x, p['attn_norm_w'])
    x2 = h.reshape(-1, D)
    q = (x2 @ p['wq']).reshape(Bb, Nn, N_HEAD, QK_HEAD)
    q_nope, q_rope = q[..., :QK_NOPE], q[..., QK_NOPE:]
    q = jnp.concatenate([q_nope, apply_rope(q_rope, cos, sin)], axis=-1)
    kv_a = (x2 @ p['wkv_a']).reshape(Bb, Nn, QK_ROPE + KV_LORA)
    k_rope, kv = kv_a[..., :QK_ROPE], kv_a[..., QK_ROPE:]
    k_rope = apply_rope(k_rope[:, :, None, :], cos, sin)
    kv_b = (_rms_ref(kv, p['kv_norm_w']) @ p['wkv_b']).reshape(
        Bb, Nn, N_HEAD, QK_NOPE + V_HEAD)
    k_nope, v = kv_b[..., :QK_NOPE], kv_b[..., QK_NOPE:]
    k = jnp.concatenate(
        [k_nope, jnp.broadcast_to(k_rope, (Bb, Nn, N_HEAD, QK_ROPE))], axis=-1)
    qt, kt, vt = (t.transpose(0, 2, 1, 3) for t in (q, k, v))
    s = jnp.einsum('bhnd,bhmd->bhnm', qt, kt) * (QK_HEAD ** -0.5) + mask
    a = jax.nn.softmax(s, axis=-1)
    o = jnp.einsum('bhnm,bhmd->bhnd', a, vt)
    o = o.transpose(0, 2, 1, 3).reshape(Bb, Nn, N_HEAD * V_HEAD)
    x = x + (o @ p['wo'])
    h = _rms_ref(x, p['mlp_norm_w'])
    h1 = h @ p['w1']
    g = h1 * jax.nn.sigmoid(h1) * (h @ p['w3'])
    x = x + g @ p['w2']
    return x, 0.0


# ----------------------------------------------------------------------------

if __name__ == "__main__":
    key = jax.random.PRNGKey(0)
    ks = jax.random.split(key, 8)
    init = lambda k, shape: jax.random.normal(k, shape, jnp.float32) * 0.05

    params = {
        'attn_norm_w': jnp.ones((DIM,), jnp.float32),
        'mlp_norm_w': jnp.ones((DIM,), jnp.float32),
        'kv_norm_w': jnp.ones((KV_LORA,), jnp.float32),
        'wq':     init(ks[0], (DIM, N_HEAD * QK_HEAD)),
        'wkv_a':  init(ks[1], (DIM, QK_ROPE + KV_LORA)),
        'wkv_b':  init(ks[2], (KV_LORA, N_HEAD * (QK_NOPE + V_HEAD))),
        'wo':     init(ks[3], (N_HEAD * V_HEAD, DIM)),
        'w1':     init(ks[4], (DIM, INTER)),
        'w3':     init(ks[5], (DIM, INTER)),
        'w2':     init(ks[6], (INTER, DIM)),
    }

    x = jax.random.normal(ks[7], (B, N, DIM), jnp.float32)

    # rope_emb for positions [0, N) as (cos, sin) of shape (N, QK_ROPE // 2).
    pos = jnp.arange(N, dtype=jnp.float32)
    inv_freq = 1.0 / (10000.0 ** (jnp.arange(0, QK_ROPE, 2, dtype=jnp.float32) / QK_ROPE))
    ang = pos[:, None] * inv_freq[None, :]
    cos, sin = jnp.cos(ang), jnp.sin(ang)

    # additive causal mask (N, N)
    mask = jnp.where(jnp.arange(N)[None, :] <= jnp.arange(N)[:, None],
                     0.0, NEG_INF).astype(jnp.float32)

    # One-time prep (hoisted): fused/permuted weights, rope tables, packed mask.
    prepped = prepare_block(params, cos, sin, mask, B, N)

    out, aux = block_forward(prepped, x)
    out = jax.block_until_ready(out)

    ref, _ = block_reference(params, x, cos, sin, mask)
    np.testing.assert_allclose(np.asarray(out), np.asarray(ref), rtol=2e-3, atol=2e-3)

    print("KERNEL_OK")
</pallas_src>

<mosaic_0001>
module attributes {stable_mosaic.version = 11 : i64} {
  func.func @_block_kernel(%arg0: memref<16x128xf32, #tpu.memory_space<vmem>>, %arg1: memref<128x168xf32, #tpu.memory_space<vmem>>, %arg2: memref<64x128xf32, #tpu.memory_space<vmem>>, %arg3: memref<64x128xf32, #tpu.memory_space<vmem>>, %arg4: memref<128x512xf32, #tpu.memory_space<vmem>>, %arg5: memref<256x128xf32, #tpu.memory_space<vmem>>, %arg6: memref<1x128xf32, #tpu.memory_space<vmem>>, %arg7: memref<1x128xf32, #tpu.memory_space<vmem>>, %arg8: memref<1x64xf32, #tpu.memory_space<vmem>>, %arg9: memref<16x16xf32, #tpu.memory_space<vmem>>, %arg10: memref<16x16xf32, #tpu.memory_space<vmem>>, %arg11: memref<16x16xf32, #tpu.memory_space<vmem>>, %arg12: memref<16x128xf32, #tpu.memory_space<vmem>>) attributes {dimension_semantics = [], scalar_prefetch = 0 : i64, scratch_operands = 0 : i64, tpu.core_type = #tpu.core_type<tc>} {
    %c0 = arith.constant 0 : index
    %c0_0 = arith.constant 0 : index
    %0 = vector.load %arg0[%c0, %c0_0] : memref<16x128xf32, #tpu.memory_space<vmem>>, vector<16x128xf32>
    %c0_1 = arith.constant 0 : index
    %c0_2 = arith.constant 0 : index
    %1 = vector.load %arg6[%c0_1, %c0_2] : memref<1x128xf32, #tpu.memory_space<vmem>>, vector<1x128xf32>
    %2 = arith.mulf %0, %0 : vector<16x128xf32>
    %cst = arith.constant dense<0.000000e+00> : vector<16xf32>
    %3 = vector.multi_reduction <add>, %2, %cst [1] : vector<16x128xf32> to vector<16xf32>
    %4 = vector.shape_cast %3 : vector<16xf32> to vector<16x1xf32>
    %cst_3 = arith.constant 1.280000e+02 : f32
    %5 = vector.broadcast %cst_3 : f32 to vector<16x1xf32>
    %6 = arith.divf %4, %5 : vector<16x1xf32>
    %cst_4 = arith.constant 9.99999997E-7 : f32
    %7 = vector.broadcast %cst_4 : f32 to vector<16x1xf32>
    %8 = arith.addf %6, %7 : vector<16x1xf32>
    %9 = math.rsqrt %8 : vector<16x1xf32>
    %10 = vector.broadcast %9 : vector<16x1xf32> to vector<16x128xf32>
    %11 = arith.mulf %0, %10 : vector<16x128xf32>
    %12 = vector.broadcast %1 : vector<1x128xf32> to vector<16x128xf32>
    %13 = arith.mulf %11, %12 : vector<16x128xf32>
    %c0_5 = arith.constant 0 : index
    %c0_6 = arith.constant 0 : index
    %14 = vector.load %arg1[%c0_5, %c0_6] : memref<128x168xf32, #tpu.memory_space<vmem>>, vector<128x168xf32>
    %cst_7 = arith.constant dense<0.000000e+00> : vector<16x168xf32>
    %15 = tpu.matmul %13, %14, %cst_7 {dimension_numbers = #tpu.dot_dimension_numbers<[1], [0], [0], [1], [0, 0, 1, 1], [], []>} : vector<16x128xf32>, vector<128x168xf32>, vector<16x168xf32> -> vector<16x168xf32>
    %16 = vector.extract_strided_slice %15 {offsets = [0, 0], sizes = [16, 96], strides = [1, 1]} : vector<16x168xf32> to vector<16x96xf32>
    %17 = vector.extract_strided_slice %15 {offsets = [0, 96], sizes = [16, 72], strides = [1, 1]} : vector<16x168xf32> to vector<16x72xf32>
    %c0_8 = arith.constant 0 : index
    %c0_9 = arith.constant 0 : index
    %18 = vector.load %arg9[%c0_8, %c0_9] : memref<16x16xf32, #tpu.memory_space<vmem>>, vector<16x16xf32>
    %c0_10 = arith.constant 0 : index
    %c0_11 = arith.constant 0 : index
    %19 = vector.load %arg10[%c0_10, %c0_11] : memref<16x16xf32, #tpu.memory_space<vmem>>, vector<16x16xf32>
    %20 = vector.extract_strided_slice %18 {offsets = [0, 0], sizes = [16, 4], strides = [1, 1]} : vector<16x16xf32> to vector<16x4xf32>
    %21 = vector.extract_strided_slice %19 {offsets = [0, 0], sizes = [16, 4], strides = [1, 1]} : vector<16x16xf32> to vector<16x4xf32>
    %22 = vector.extract_strided_slice %16 {offsets = [0, 64], sizes = [16, 16], strides = [1, 1]} : vector<16x96xf32> to vector<16x16xf32>
    %23 = vector.extract_strided_slice %16 {offsets = [0, 80], sizes = [16, 16], strides = [1, 1]} : vector<16x96xf32> to vector<16x16xf32>
    %24 = arith.mulf %22, %18 : vector<16x16xf32>
    %25 = arith.mulf %23, %19 : vector<16x16xf32>
    %26 = arith.subf %24, %25 : vector<16x16xf32>
    %27 = arith.mulf %22, %19 : vector<16x16xf32>
    %28 = arith.mulf %23, %18 : vector<16x16xf32>
    %29 = arith.addf %27, %28 : vector<16x16xf32>
    %30 = vector.extract_strided_slice %17 {offsets = [0, 0], sizes = [16, 4], strides = [1, 1]} : vector<16x72xf32> to vector<16x4xf32>
    %31 = vector.extract_strided_slice %17 {offsets = [0, 4], sizes = [16, 4], strides = [1, 1]} : vector<16x72xf32> to vector<16x4xf32>
    %32 = arith.mulf %30, %20 : vector<16x4xf32>
    %33 = arith.mulf %31, %21 : vector<16x4xf32>
    %34 = arith.subf %32, %33 : vector<16x4xf32>
    %35 = arith.mulf %30, %21 : vector<16x4xf32>
    %36 = arith.mulf %31, %20 : vector<16x4xf32>
    %37 = arith.addf %35, %36 : vector<16x4xf32>
    %38 = tpu.concatenate %34, %37 in 1 : vector<16x4xf32>, vector<16x4xf32> -> vector<16x8xf32>
    %39 = vector.extract_strided_slice %17 {offsets = [0, 8], sizes = [16, 64], strides = [1, 1]} : vector<16x72xf32> to vector<16x64xf32>
    %c0_12 = arith.constant 0 : index
    %c0_13 = arith.constant 0 : index
    %40 = vector.load %arg8[%c0_12, %c0_13] : memref<1x64xf32, #tpu.memory_space<vmem>>, vector<1x64xf32>
    %41 = arith.mulf %39, %39 : vector<16x64xf32>
    %cst_14 = arith.constant dense<0.000000e+00> : vector<16xf32>
    %42 = vector.multi_reduction <add>, %41, %cst_14 [1] : vector<16x64xf32> to vector<16xf32>
    %43 = vector.shape_cast %42 : vector<16xf32> to vector<16x1xf32>
    %cst_15 = arith.constant 6.400000e+01 : f32
    %44 = vector.broadcast %cst_15 : f32 to vector<16x1xf32>
    %45 = arith.divf %43, %44 : vector<16x1xf32>
    %cst_16 = arith.constant 9.99999997E-7 : f32
    %46 = vector.broadcast %cst_16 : f32 to vector<16x1xf32>
    %47 = arith.addf %45, %46 : vector<16x1xf32>
    %48 = math.rsqrt %47 : vector<16x1xf32>
    %49 = vector.broadcast %48 : vector<16x1xf32> to vector<16x64xf32>
    %50 = arith.mulf %39, %49 : vector<16x64xf32>
    %51 = vector.broadcast %40 : vector<1x64xf32> to vector<16x64xf32>
    %52 = arith.mulf %50, %51 : vector<16x64xf32>
    %c0_17 = arith.constant 0 : index
    %c0_18 = arith.constant 0 : index
    %53 = vector.load %arg2[%c0_17, %c0_18] : memref<64x128xf32, #tpu.memory_space<vmem>>, vector<64x128xf32>
    %cst_19 = arith.constant dense<0.000000e+00> : vector<16x128xf32>
    %54 = tpu.matmul %52, %53, %cst_19 {dimension_numbers = #tpu.dot_dimension_numbers<[1], [0], [0], [1], [0, 0, 1, 1], [], []>} : vector<16x64xf32>, vector<64x128xf32>, vector<16x128xf32> -> vector<16x128xf32>
    %55 = vector.extract_strided_slice %54 {offsets = [0, 0], sizes = [16, 64], strides = [1, 1]} : vector<16x128xf32> to vector<16x64xf32>
    %56 = vector.extract_strided_slice %54 {offsets = [0, 64], sizes = [16, 64], strides = [1, 1]} : vector<16x128xf32> to vector<16x64xf32>
    %c0_20 = arith.constant 0 : index
    %c0_21 = arith.constant 0 : index
    %57 = vector.load %arg11[%c0_20, %c0_21] : memref<16x16xf32, #tpu.memory_space<vmem>>, vector<16x16xf32>
    %58 = vector.extract_strided_slice %16 {offsets = [0, 0], sizes = [16, 16], strides = [1, 1]} : vector<16x96xf32> to vector<16x16xf32>
    %59 = vector.extract_strided_slice %26 {offsets = [0, 0], sizes = [16, 4], strides = [1, 1]} : vector<16x16xf32> to vector<16x4xf32>
    %60 = vector.extract_strided_slice %29 {offsets = [0, 0], sizes = [16, 4], strides = [1, 1]} : vector<16x16xf32> to vector<16x4xf32>
    %61 = tpu.concatenate %58, %59, %60 in 1 : vector<16x16xf32>, vector<16x4xf32>, vector<16x4xf32> -> vector<16x24xf32>
    %62 = vector.extract_strided_slice %55 {offsets = [0, 0], sizes = [16, 16], strides = [1, 1]} : vector<16x64xf32> to vector<16x16xf32>
    %63 = tpu.concatenate %62, %38 in 1 : vector<16x16xf32>, vector<16x8xf32> -> vector<16x24xf32>
    %cst_22 = arith.constant dense<0.000000e+00> : vector<16x16xf32>
    %64 = tpu.matmul %61, %63, %cst_22 {dimension_numbers = #tpu.dot_dimension_numbers<[1], [1], [0], [0], [0, 0, 1, 0], [], []>} : vector<16x24xf32>, vector<16x24xf32>, vector<16x16xf32> -> vector<16x16xf32>
    %cst_23 = arith.constant 0.204124153 : f32
    %65 = vector.broadcast %cst_23 : f32 to vector<16x16xf32>
    %66 = arith.mulf %64, %65 : vector<16x16xf32>
    %67 = arith.addf %66, %57 : vector<16x16xf32>
    %cst_24 = arith.constant dense<0xFF800000> : vector<16xf32>
    %68 = vector.multi_reduction <maximumf>, %67, %cst_24 [1] : vector<16x16xf32> to vector<16xf32>
    %69 = vector.shape_cast %68 : vector<16xf32> to vector<16x1xf32>
    %70 = vector.broadcast %69 : vector<16x1xf32> to vector<16x16xf32>
    %71 = arith.subf %67, %70 : vector<16x16xf32>
    %72 = math.exp %71 : vector<16x16xf32>
    %cst_25 = arith.constant dense<0.000000e+00> : vector<16xf32>
    %73 = vector.multi_reduction <add>, %72, %cst_25 [1] : vector<16x16xf32> to vector<16xf32>
    %74 = vector.shape_cast %73 : vector<16xf32> to vector<16x1xf32>
    %75 = tpu.reciprocal %74 {approx = true} : vector<16x1xf32> -> vector<16x1xf32>
    %76 = vector.broadcast %75 : vector<16x1xf32> to vector<16x16xf32>
    %77 = arith.mulf %72, %76 : vector<16x16xf32>
    %78 = vector.extract_strided_slice %56 {offsets = [0, 0], sizes = [16, 16], strides = [1, 1]} : vector<16x64xf32> to vector<16x16xf32>
    %cst_26 = arith.constant dense<0.000000e+00> : vector<16x16xf32>
    %79 = tpu.matmul %77, %78, %cst_26 {dimension_numbers = #tpu.dot_dimension_numbers<[1], [0], [0], [1], [0, 0, 1, 1], [], []>} : vector<16x16xf32>, vector<16x16xf32>, vector<16x16xf32> -> vector<16x16xf32>
    %80 = vector.extract_strided_slice %16 {offsets = [0, 16], sizes = [16, 16], strides = [1, 1]} : vector<16x96xf32> to vector<16x16xf32>
    %81 = vector.extract_strided_slice %26 {offsets = [0, 4], sizes = [16, 4], strides = [1, 1]} : vector<16x16xf32> to vector<16x4xf32>
    %82 = vector.extract_strided_slice %29 {offsets = [0, 4], sizes = [16, 4], strides = [1, 1]} : vector<16x16xf32> to vector<16x4xf32>
    %83 = tpu.concatenate %80, %81, %82 in 1 : vector<16x16xf32>, vector<16x4xf32>, vector<16x4xf32> -> vector<16x24xf32>
    %84 = vector.extract_strided_slice %55 {offsets = [0, 16], sizes = [16, 16], strides = [1, 1]} : vector<16x64xf32> to vector<16x16xf32>
    %85 = tpu.concatenate %84, %38 in 1 : vector<16x16xf32>, vector<16x8xf32> -> vector<16x24xf32>
    %cst_27 = arith.constant dense<0.000000e+00> : vector<16x16xf32>
    %86 = tpu.matmul %83, %85, %cst_27 {dimension_numbers = #tpu.dot_dimension_numbers<[1], [1], [0], [0], [0, 0, 1, 0], [], []>} : vector<16x24xf32>, vector<16x24xf32>, vector<16x16xf32> -> vector<16x16xf32>
    %cst_28 = arith.constant 0.204124153 : f32
    %87 = vector.broadcast %cst_28 : f32 to vector<16x16xf32>
    %88 = arith.mulf %86, %87 : vector<16x16xf32>
    %89 = arith.addf %88, %57 : vector<16x16xf32>
    %cst_29 = arith.constant dense<0xFF800000> : vector<16xf32>
    %90 = vector.multi_reduction <maximumf>, %89, %cst_29 [1] : vector<16x16xf32> to vector<16xf32>
    %91 = vector.shape_cast %90 : vector<16xf32> to vector<16x1xf32>
    %92 = vector.broadcast %91 : vector<16x1xf32> to vector<16x16xf32>
    %93 = arith.subf %89, %92 : vector<16x16xf32>
    %94 = math.exp %93 : vector<16x16xf32>
    %cst_30 = arith.constant dense<0.000000e+00> : vector<16xf32>
    %95 = vector.multi_reduction <add>, %94, %cst_30 [1] : vector<16x16xf32> to vector<16xf32>
    %96 = vector.shape_cast %95 : vector<16xf32> to vector<16x1xf32>
    %97 = tpu.reciprocal %96 {approx = true} : vector<16x1xf32> -> vector<16x1xf32>
    %98 = vector.broadcast %97 : vector<16x1xf32> to vector<16x16xf32>
    %99 = arith.mulf %94, %98 : vector<16x16xf32>
    %100 = vector.extract_strided_slice %56 {offsets = [0, 16], sizes = [16, 16], strides = [1, 1]} : vector<16x64xf32> to vector<16x16xf32>
    %cst_31 = arith.constant dense<0.000000e+00> : vector<16x16xf32>
    %101 = tpu.matmul %99, %100, %cst_31 {dimension_numbers = #tpu.dot_dimension_numbers<[1], [0], [0], [1], [0, 0, 1, 1], [], []>} : vector<16x16xf32>, vector<16x16xf32>, vector<16x16xf32> -> vector<16x16xf32>
    %102 = vector.extract_strided_slice %16 {offsets = [0, 32], sizes = [16, 16], strides = [1, 1]} : vector<16x96xf32> to vector<16x16xf32>
    %103 = vector.extract_strided_slice %26 {offsets = [0, 8], sizes = [16, 4], strides = [1, 1]} : vector<16x16xf32> to vector<16x4xf32>
    %104 = vector.extract_strided_slice %29 {offsets = [0, 8], sizes = [16, 4], strides = [1, 1]} : vector<16x16xf32> to vector<16x4xf32>
    %105 = tpu.concatenate %102, %103, %104 in 1 : vector<16x16xf32>, vector<16x4xf32>, vector<16x4xf32> -> vector<16x24xf32>
    %106 = vector.extract_strided_slice %55 {offsets = [0, 32], sizes = [16, 16], strides = [1, 1]} : vector<16x64xf32> to vector<16x16xf32>
    %107 = tpu.concatenate %106, %38 in 1 : vector<16x16xf32>, vector<16x8xf32> -> vector<16x24xf32>
    %cst_32 = arith.constant dense<0.000000e+00> : vector<16x16xf32>
    %108 = tpu.matmul %105, %107, %cst_32 {dimension_numbers = #tpu.dot_dimension_numbers<[1], [1], [0], [0], [0, 0, 1, 0], [], []>} : vector<16x24xf32>, vector<16x24xf32>, vector<16x16xf32> -> vector<16x16xf32>
    %cst_33 = arith.constant 0.204124153 : f32
    %109 = vector.broadcast %cst_33 : f32 to vector<16x16xf32>
    %110 = arith.mulf %108, %109 : vector<16x16xf32>
    %111 = arith.addf %110, %57 : vector<16x16xf32>
    %cst_34 = arith.constant dense<0xFF800000> : vector<16xf32>
    %112 = vector.multi_reduction <maximumf>, %111, %cst_34 [1] : vector<16x16xf32> to vector<16xf32>
    %113 = vector.shape_cast %112 : vector<16xf32> to vector<16x1xf32>
    %114 = vector.broadcast %113 : vector<16x1xf32> to vector<16x16xf32>
    %115 = arith.subf %111, %114 : vector<16x16xf32>
    %116 = math.exp %115 : vector<16x16xf32>
    %cst_35 = arith.constant dense<0.000000e+00> : vector<16xf32>
    %117 = vector.multi_reduction <add>, %116, %cst_35 [1] : vector<16x16xf32> to vector<16xf32>
    %118 = vector.shape_cast %117 : vector<16xf32> to vector<16x1xf32>
    %119 = tpu.reciprocal %118 {approx = true} : vector<16x1xf32> -> vector<16x1xf32>
    %120 = vector.broadcast %119 : vector<16x1xf32> to vector<16x16xf32>
    %121 = arith.mulf %116, %120 : vector<16x16xf32>
    %122 = vector.extract_strided_slice %56 {offsets = [0, 32], sizes = [16, 16], strides = [1, 1]} : vector<16x64xf32> to vector<16x16xf32>
    %cst_36 = arith.constant dense<0.000000e+00> : vector<16x16xf32>
    %123 = tpu.matmul %121, %122, %cst_36 {dimension_numbers = #tpu.dot_dimension_numbers<[1], [0], [0], [1], [0, 0, 1, 1], [], []>} : vector<16x16xf32>, vector<16x16xf32>, vector<16x16xf32> -> vector<16x16xf32>
    %124 = vector.extract_strided_slice %16 {offsets = [0, 48], sizes = [16, 16], strides = [1, 1]} : vector<16x96xf32> to vector<16x16xf32>
    %125 = vector.extract_strided_slice %26 {offsets = [0, 12], sizes = [16, 4], strides = [1, 1]} : vector<16x16xf32> to vector<16x4xf32>
    %126 = vector.extract_strided_slice %29 {offsets = [0, 12], sizes = [16, 4], strides = [1, 1]} : vector<16x16xf32> to vector<16x4xf32>
    %127 = tpu.concatenate %124, %125, %126 in 1 : vector<16x16xf32>, vector<16x4xf32>, vector<16x4xf32> -> vector<16x24xf32>
    %128 = vector.extract_strided_slice %55 {offsets = [0, 48], sizes = [16, 16], strides = [1, 1]} : vector<16x64xf32> to vector<16x16xf32>
    %129 = tpu.concatenate %128, %38 in 1 : vector<16x16xf32>, vector<16x8xf32> -> vector<16x24xf32>
    %cst_37 = arith.constant dense<0.000000e+00> : vector<16x16xf32>
    %130 = tpu.matmul %127, %129, %cst_37 {dimension_numbers = #tpu.dot_dimension_numbers<[1], [1], [0], [0], [0, 0, 1, 0], [], []>} : vector<16x24xf32>, vector<16x24xf32>, vector<16x16xf32> -> vector<16x16xf32>
    %cst_38 = arith.constant 0.204124153 : f32
    %131 = vector.broadcast %cst_38 : f32 to vector<16x16xf32>
    %132 = arith.mulf %130, %131 : vector<16x16xf32>
    %133 = arith.addf %132, %57 : vector<16x16xf32>
    %cst_39 = arith.constant dense<0xFF800000> : vector<16xf32>
    %134 = vector.multi_reduction <maximumf>, %133, %cst_39 [1] : vector<16x16xf32> to vector<16xf32>
    %135 = vector.shape_cast %134 : vector<16xf32> to vector<16x1xf32>
    %136 = vector.broadcast %135 : vector<16x1xf32> to vector<16x16xf32>
    %137 = arith.subf %133, %136 : vector<16x16xf32>
    %138 = math.exp %137 : vector<16x16xf32>
    %cst_40 = arith.constant dense<0.000000e+00> : vector<16xf32>
    %139 = vector.multi_reduction <add>, %138, %cst_40 [1] : vector<16x16xf32> to vector<16xf32>
    %140 = vector.shape_cast %139 : vector<16xf32> to vector<16x1xf32>
    %141 = tpu.reciprocal %140 {approx = true} : vector<16x1xf32> -> vector<16x1xf32>
    %142 = vector.broadcast %141 : vector<16x1xf32> to vector<16x16xf32>
    %143 = arith.mulf %138, %142 : vector<16x16xf32>
    %144 = vector.extract_strided_slice %56 {offsets = [0, 48], sizes = [16, 16], strides = [1, 1]} : vector<16x64xf32> to vector<16x16xf32>
    %cst_41 = arith.constant dense<0.000000e+00> : vector<16x16xf32>
    %145 = tpu.matmul %143, %144, %cst_41 {dimension_numbers = #tpu.dot_dimension_numbers<[1], [0], [0], [1], [0, 0, 1, 1], [], []>} : vector<16x16xf32>, vector<16x16xf32>, vector<16x16xf32> -> vector<16x16xf32>
    %146 = tpu.concatenate %79, %101, %123, %145 in 1 : vector<16x16xf32>, vector<16x16xf32>, vector<16x16xf32>, vector<16x16xf32> -> vector<16x64xf32>
    %c0_42 = arith.constant 0 : index
    %c0_43 = arith.constant 0 : index
    %147 = vector.load %arg3[%c0_42, %c0_43] : memref<64x128xf32, #tpu.memory_space<vmem>>, vector<64x128xf32>
    %cst_44 = arith.constant dense<0.000000e+00> : vector<16x128xf32>
    %148 = tpu.matmul %146, %147, %cst_44 {dimension_numbers = #tpu.dot_dimension_numbers<[1], [0], [0], [1], [0, 0, 1, 1], [], []>} : vector<16x64xf32>, vector<64x128xf32>, vector<16x128xf32> -> vector<16x128xf32>
    %149 = arith.addf %0, %148 : vector<16x128xf32>
    %c0_45 = arith.constant 0 : index
    %c0_46 = arith.constant 0 : index
    %150 = vector.load %arg7[%c0_45, %c0_46] : memref<1x128xf32, #tpu.memory_space<vmem>>, vector<1x128xf32>
    %151 = arith.mulf %149, %149 : vector<16x128xf32>
    %cst_47 = arith.constant dense<0.000000e+00> : vector<16xf32>
    %152 = vector.multi_reduction <add>, %151, %cst_47 [1] : vector<16x128xf32> to vector<16xf32>
    %153 = vector.shape_cast %152 : vector<16xf32> to vector<16x1xf32>
    %cst_48 = arith.constant 1.280000e+02 : f32
    %154 = vector.broadcast %cst_48 : f32 to vector<16x1xf32>
    %155 = arith.divf %153, %154 : vector<16x1xf32>
    %cst_49 = arith.constant 9.99999997E-7 : f32
    %156 = vector.broadcast %cst_49 : f32 to vector<16x1xf32>
    %157 = arith.addf %155, %156 : vector<16x1xf32>
    %158 = math.rsqrt %157 : vector<16x1xf32>
    %159 = vector.broadcast %158 : vector<16x1xf32> to vector<16x128xf32>
    %160 = arith.mulf %149, %159 : vector<16x128xf32>
    %161 = vector.broadcast %150 : vector<1x128xf32> to vector<16x128xf32>
    %162 = arith.mulf %160, %161 : vector<16x128xf32>
    %c0_50 = arith.constant 0 : index
    %c0_51 = arith.constant 0 : index
    %163 = vector.load %arg4[%c0_50, %c0_51] : memref<128x512xf32, #tpu.memory_space<vmem>>, vector<128x512xf32>
    %cst_52 = arith.constant dense<0.000000e+00> : vector<16x512xf32>
    %164 = tpu.matmul %162, %163, %cst_52 {dimension_numbers = #tpu.dot_dimension_numbers<[1], [0], [0], [1], [0, 0, 1, 1], [], []>} : vector<16x128xf32>, vector<128x512xf32>, vector<16x512xf32> -> vector<16x512xf32>
    %165 = vector.extract_strided_slice %164 {offsets = [0, 0], sizes = [16, 256], strides = [1, 1]} : vector<16x512xf32> to vector<16x256xf32>
    %166 = vector.extract_strided_slice %164 {offsets = [0, 256], sizes = [16, 256], strides = [1, 1]} : vector<16x512xf32> to vector<16x256xf32>
    %167 = arith.negf %165 : vector<16x256xf32>
    %168 = math.exp %167 : vector<16x256xf32>
    %cst_53 = arith.constant 1.000000e+00 : f32
    %169 = vector.broadcast %cst_53 : f32 to vector<16x256xf32>
    %170 = arith.addf %169, %168 : vector<16x256xf32>
    %171 = arith.divf %169, %170 : vector<16x256xf32>
    %172 = arith.mulf %165, %171 : vector<16x256xf32>
    %173 = arith.mulf %172, %166 : vector<16x256xf32>
    %c0_54 = arith.constant 0 : index
    %c0_55 = arith.constant 0 : index
    %174 = vector.load %arg5[%c0_54, %c0_55] : memref<256x128xf32, #tpu.memory_space<vmem>>, vector<256x128xf32>
    %cst_56 = arith.constant dense<0.000000e+00> : vector<16x128xf32>
    %175 = tpu.matmul %173, %174, %cst_56 {dimension_numbers = #tpu.dot_dimension_numbers<[1], [0], [0], [1], [0, 0, 1, 1], [], []>} : vector<16x256xf32>, vector<256x128xf32>, vector<16x128xf32> -> vector<16x128xf32>
    %176 = arith.addf %149, %175 : vector<16x128xf32>
    %c0_57 = arith.constant 0 : index
    %c0_58 = arith.constant 0 : index
    %177 = vector.load %arg12[%c0_57, %c0_58] : memref<16x128xf32, #tpu.memory_space<vmem>>, vector<16x128xf32>
    tpu.vector_store %arg12[%c0_57, %c0_58], %176 {strides = array<i32>} : memref<16x128xf32, #tpu.memory_space<vmem>>, vector<16x128xf32>,
    return
  }
}

</mosaic_0001>

<bundles_post_ra>
// kernel: block_forward.1
= control target key start
LH: loop header
LB: loop body
LE: loop exit
PB: predicated region body
PF: predicated region fallthrough
CT: control target
= control target key end

     0   :  { %17 = vsyncpa [#allocation3], 0  ;;  %s2986_s0 = inlined_call_operand.vmem [shape: f32[16,128], index: 0, kind: input, shape index: {}]   ;;  %s2987_s1 = inlined_call_operand.vmem [shape: f32[128,168], index: 1, kind: input, shape index: {}]   ;;  %s2988_s2 = inlined_call_operand.vmem [shape: f32[64,128], index: 2, kind: input, shape index: {}]   ;;  %s2989_s3 = inlined_call_operand.vmem [shape: f32[64,128], index: 3, kind: input, shape index: {}]   ;;  %s2990_s4 = inlined_call_operand.hbm [shape: f32[128,512], index: 4, kind: input, shape index: {}]   ;;  %s2991_s5 = inlined_call_operand.vmem [shape: f32[256,128], index: 5, kind: input, shape index: {}]   ;;  %s2992_s6 = inlined_call_operand.vmem [shape: f32[1,128], index: 6, kind: input, shape index: {}]   ;;  %s2993_s7 = inlined_call_operand.vmem [shape: f32[1,128], index: 7, kind: input, shape index: {}]   ;;  %s2994_s8 = inlined_call_operand.vmem [shape: f32[1,64], index: 8, kind: input, shape index: {}]   ;;  %s2995_s9 = inlined_call_operand.vmem [shape: f32[16,16], index: 9, kind: input, shape index: {}]   ;;  %s2996_s10 = inlined_call_operand.hbm [shape: f32[16,16], index: 10, kind: input, shape index: {}]   ;;  %s2997_s11 = inlined_call_operand.vmem [shape: f32[16,16], index: 11, kind: input, shape index: {}]   ;;  %s2998_s12 = inlined_call_operand.hbm [shape: f32[16,128], index: 12, kind: output, shape index: {}]  }
   0x1   :  { %18 = vsyncpa [#allocation6], 0 }
   0x2   :  { %19 = vsyncpa [#allocation4], 0  ;;  %s2312_s21 = smov [#allocation2]  }
   0x3   :  { %s33_s22 = sshll.u32 %s2312_s21, 4  ;;  %s34_s22 = int_to_ptr.vmem [resolvable:$true] %s33_s22 }
   0x4   :  { %s2254_s23 = scalar_lea.vmem %s34_s22, 8192  ;;  %p2259_p1 = scmp.lt.s32.totalorder %s34_s22, %s34_s22 }
   0x5   :  { %p2255_p0 = scmp.ne.s32.totalorder %s34_s22, %s2254_s23  ;;  %p2260_p2 = scmp.lt.s32.totalorder %s2254_s23, %s2254_s23 }
   0x7   :  { %p2261_p3 = por %p2260_p2, %p2259_p1 }
   0x9   :  { %p2262_p4 = pnand %p2261_p3, %p2255_p0 }
   0xb   :  { %2265 = shalt.err (!%p2262_p4)
}
   0xc   :  { %s2313_s24 = smov 512   ;;  %s2314_s25 = smov 32  }
   0xd   :  { %39 = dma.hbm_to_vmem [thread:$0]  %s2990_s4, 8192, %s34_s22, [#allocation3], %s2313_s24, %s2313_s24, %s2314_s25  }
   0xe   :  { %s2315_s28 = smov [#allocation5]  }
   0xf   :  { %s55_s29 = sshll.u32 %s2315_s28, 4  ;;  %s56_s29 = int_to_ptr.vmem [resolvable:$true] %s55_s29 }
  0x10   :  { %s2274_s30 = scalar_lea.vmem %s56_s29, 256  ;;  %p2279_p6 = scmp.lt.s32.totalorder %s56_s29, %s56_s29 }
  0x11   :  { %p2275_p5 = scmp.ne.s32.totalorder %s56_s29, %s2274_s30  ;;  %p2280_p7 = scmp.lt.s32.totalorder %s2274_s30, %s2274_s30 }
  0x13   :  { %p2281_p8 = por %p2280_p7, %p2279_p6 }
  0x15   :  { %p2282_p9 = pnand %p2281_p8, %p2275_p5 }
  0x17   :  { %2285 = shalt.err (!%p2282_p9)
}
  0x18   :  { %s2316_s13 = smov 128   ;;  %s2317_s14 = smov 8  }
  0x19   :  { %61 = dma.hbm_to_vmem [thread:$0]  %s2996_s10, 256, %s56_s29, [#allocation6], %s2316_s13, %s2316_s13, %s2317_s14  }
  0x1a   :  { %2306 = dma.done.wait [#allocation3], 8192  }
  0x1b   :  { %2307 = vsyncadd [#allocation3], 4294959104 }
  0x1c   :  { %2308 = dma.done.wait [#allocation6], 256  }
  0x1d   :  { %2309 = vsyncadd [#allocation6], 4294967040  ;;  %v2413_v0 = vld [vmem:[%s2986_s0] sm:$0xff]  ;;  %v2418_v1 = vld [vmem:[%s2986_s0 + $0x8] sm:$0xff]  ;;  %v2318_v27 = vmov 0.0   ;;  %vm353_vm0 = vcmask 195584  }
  0x1e   :  { %v127_v2 = vld [vmem:[%s2987_s1 + $0xf8] sm:$0xff]  ;;  %v73_v3 = vmul.f32 %v2413_v0, %v2413_v0  ;;  %v126_v4 = vld [vmem:[%s2987_s1 + $0xf0] sm:$0xff]  ;;  %v125_v5 = vld [vmem:[%s2987_s1 + $0xe8] sm:$0xff]  ;;  %v74_v8 = vmul.f32 %v2418_v1, %v2418_v1  ;;  %192 = vmatprep.mubr.f32.mxu0 %v2318_v27  ;;  %vm358_vm1 = vcmask 523264   ;;  %s2320_s19 = smov 104   ;;  %s2325_s10 = smov 36  }
  0x1f   :  { %128 = vmatprep.subr.mxu0 %v127_v2  ;;  %v124_v6 = vld [vmem:[%s2987_s1 + $0xe0] sm:$0xff]  ;;  %v123_v7 = vld [vmem:[%s2987_s1 + $0xd8] sm:$0xff]  ;;  %v122_v9 = vld [vmem:[%s2987_s1 + $0xd0] sm:$0xff]  ;;  %s2326_s22 = smov 64   ;;  %s2327_s23 = smov 112   ;;  %vm333_vm2 = vcmask 31744  }
  0x20   :  { %129 = vmatpush1.msra.mxu0 %v126_v4  ;;  %75 = vadd.xlane.f32.xlu0 %v73_v3  ;;  %v121_v10 = vld [vmem:[%s2987_s1 + $0xc8] sm:$0xff]  ;;  %v120_v11 = vld [vmem:[%s2987_s1 + $0xc0] sm:$0xff]  ;;  %v119_v12 = vld [vmem:[%s2987_s1 + $0xb8] sm:$0xff]  ;;  %s2328_s24 = smov 16   ;;  %s2329_s26 = smov 84   ;;  %vm507_vm3 = vcmask 130048  }
  0x21   :  { %130 = vmatprep.subr.mxu0 %v125_v5  ;;  %v118_v13 = vld [vmem:[%s2987_s1 + $0xb0] sm:$0xff]  ;;  %v117_v14 = vld [vmem:[%s2987_s1 + $0xa8] sm:$0xff]  ;;  %v116_v15 = vld [vmem:[%s2987_s1 + $0xa0] sm:$0xff]  ;;  %vm510_vm4 = vcmask 162816   ;;  %s2331_s30 = smov 72   ;;  %s2332_s15 = smov 68  }
  0x22   :  { %131 = vmatpush1.msra.mxu0 %v124_v6  ;;  %v115_v16 = vld [vmem:[%s2987_s1 + $0x98] sm:$0xff]  ;;  %v114_v17 = vld [vmem:[%s2987_s1 + $0x90] sm:$0xff]  ;;  %v113_v18 = vld [vmem:[%s2987_s1 + $0x88] sm:$0xff]  ;;  %s2333_s16 = smov 48   ;;  %vm1443_vm5 = vcmask 261120   ;;  %vm1446_vm6 = vcmask 392192  }
  0x23   :  { %132 = vmatprep.subr.mxu0 %v123_v7  ;;  %v112_v19 = vld [vmem:[%s2987_s1 + $0x80] sm:$0xff]  ;;  %v111_v20 = vld [vmem:[%s2987_s1 + $0x78] sm:$0xff]  ;;  %v110_v21 = vld [vmem:[%s2987_s1 + $0x70] sm:$0xff] }
  0x24   :  { %133 = vmatpush1.msra.mxu0 %v122_v9  ;;  %77 = vadd.xlane.f32.xlu0 %v74_v8  ;;  %v109_v22 = vld [vmem:[%s2987_s1 + $0x68] sm:$0xff]  ;;  %v108_v23 = vld [vmem:[%s2987_s1 + $0x60] sm:$0xff]  ;;  %v107_v24 = vld [vmem:[%s2987_s1 + $0x58] sm:$0xff] }
  0x25   :  { %134 = vmatprep.subr.mxu0 %v121_v10  ;;  %v106_v25 = vld [vmem:[%s2987_s1 + $0x50] sm:$0xff]  ;;  %v105_v26 = vld [vmem:[%s2987_s1 + $0x48] sm:$0xff]  ;;  %v104_v28 = vld [vmem:[%s2987_s1 + $0x40] sm:$0xff] }
  0x26   :  { %135 = vmatpush1.msra.mxu0 %v120_v11  ;;  %v103_v29 = vld [vmem:[%s2987_s1 + $0x38] sm:$0xff]  ;;  %v102_v30 = vld [vmem:[%s2987_s1 + $0x30] sm:$0xff]  ;;  %v101_v31 = vld [vmem:[%s2987_s1 + $0x28] sm:$0xff] }
  0x27   :  { %136 = vmatprep.subr.mxu0 %v119_v12  ;;  %v100_v32 = vld [vmem:[%s2987_s1 + $0x20] sm:$0xff]  ;;  %v99_v33 = vld [vmem:[%s2987_s1 + $0x18] sm:$0xff]  ;;  %v98_v34 = vld [vmem:[%s2987_s1 + $0x10] sm:$0xff] }
  0x28   :  { %137 = vmatpush1.msra.mxu0 %v118_v13  ;;  %v97_v35 = vld [vmem:[%s2987_s1 + $0x8] sm:$0xff]  ;;  %v96_v36 = vld [vmem:[%s2987_s1] sm:$0xff]  ;;  %s2319_s1 = smov 24   ;;  %v395_v3 = vld [vmem:[%s2988_s2 + $0x38] sm:$0xff] }
  0x29   :  { %138 = vmatprep.subr.mxu0 %v117_v14  ;;  %v1942_v44 = vld [vmem:[%s2992_s6] ss:$0 sm:$0xff]  ;;  %v394_v4 = vld [vmem:[%s2988_s2 + $0x30] sm:$0xff]  ;;  %2067 = vmatprep.subr.mxu1 %v395_v3  ;;  %v393_v5 = vld [vmem:[%s2988_s2 + $0x28] sm:$0xff] }
  0x2a   :  { %139 = vmatpush1.msra.mxu0 %v116_v15  ;;  %v1943_v2 = vld [vmem:[%s2994_s8] ss:$0 sm:$0xff]  ;;  %2068 = vmatpush3.msra.mxu1 %v395_v3  ;;  %v391_v13 = vld [vmem:[%s2988_s2 + $0x18] sm:$0xff]  ;;  %v390_v14 = vld [vmem:[%s2988_s2 + $0x10] sm:$0xff] }
  0x2b   :  { %140 = vmatprep.subr.mxu0 %v115_v16  ;;  %2069 = vmatprep.subr.mxu1 %v394_v4  ;;  %v392_v6 = vld [vmem:[%s2988_s2 + $0x20] sm:$0xff]  ;;  %v389_v15 = vld [vmem:[%s2988_s2 + $0x8] sm:$0xff] }
  0x2c   :  { %141 = vmatpush1.msra.mxu0 %v114_v17  ;;  %2070 = vmatpush3.msra.mxu1 %v394_v4  ;;  %v388_v16 = vld [vmem:[%s2988_s2] sm:$0xff]  ;;  %s2321_s2 = smov 100  }
  0x2d   :  { %142 = vmatprep.subr.mxu0 %v113_v18  ;;  %2071 = vmatprep.subr.mxu1 %v393_v5 }
  0x2e   :  { %143 = vmatpush1.msra.mxu0 %v112_v19  ;;  %2072 = vmatpush3.msra.mxu1 %v393_v5 }
  0x2f   :  { %144 = vmatprep.subr.mxu0 %v111_v20  ;;  %2073 = vmatprep.subr.mxu1 %v392_v6 }
  0x30   :  { %145 = vmatpush1.msra.mxu0 %v110_v21  ;;  %2074 = vmatpush3.msra.mxu1 %v392_v6 }
  0x31   :  { %146 = vmatprep.subr.mxu0 %v109_v22  ;;  %2075 = vmatprep.subr.mxu1 %v391_v13 }
  0x32   :  { %147 = vmatpush1.msra.mxu0 %v108_v23  ;;  %2076 = vmatpush3.msra.mxu1 %v391_v13 }
  0x33   :  { %148 = vmatprep.subr.mxu0 %v107_v24  ;;  %2077 = vmatprep.subr.mxu1 %v390_v14 }
  0x34   :  { %149 = vmatpush1.msra.mxu0 %v106_v25  ;;  %2078 = vmatpush3.msra.mxu1 %v390_v14  ;;  %v2578_v25 = vld [vmem:[#allocation5] sm:$0xff] }
  0x35   :  { %150 = vmatprep.subr.mxu0 %v105_v26  ;;  %2079 = vmatprep.subr.mxu1 %v389_v15 }
  0x36   :  { %151 = vmatpush1.msra.mxu0 %v104_v28  ;;  %2080 = vmatpush3.msra.mxu1 %v389_v15 }
  0x37   :  { %152 = vmatprep.subr.mxu0 %v103_v29  ;;  %2081 = vmatprep.subr.mxu1 %v388_v16  ;;  %v206_v29 = vld [vmem:[%s2995_s9 + $0x8] sm:$0xff] }
  0x38   :  { %153 = vmatpush1.msra.mxu0 %v102_v30  ;;  %2082 = vmatpush3.msra.mxu1 %v388_v16 }
  0x39   :  { %154 = vmatprep.subr.mxu0 %v101_v31  ;;  %v208_v31 = vld [vmem:[#allocation5 + $0x8] sm:$0xff] }
  0x3a   :  { %155 = vmatpush1.msra.mxu0 %v100_v32  ;;  %v205_v32 = vld [vmem:[%s2995_s9] sm:$0xff]  ;;  %s2324_s9 = smov 80  }
  0x3b   :  { %156 = vmatprep.subr.mxu0 %v99_v33 }
  0x3c   :  { %157 = vmatpush1.msra.mxu0 %v98_v34 }
  0x3d   :  { %158 = vmatprep.subr.mxu0 %v97_v35 }
  0x3e   :  { %159 = vmatpush1.msra.mxu0 %v96_v36 }
  0xa9   :  { %v76_v37 = vpop.xlane.xlu0 %75 }
  0xaa   :  { %v80_v38 = vmul.f32 0.0078125, %v76_v37 }
  0xac   :  { %v82_v39 = vadd.f32 1e-06, %v80_v38 }
  0xad   :  { %v78_v40 = vpop.xlane.xlu0 %77 }
  0xae   :  { %2184 = vrsqrt.f32 %v82_v39  ;;  %v81_v41 = vmul.f32 0.0078125, %v78_v40 }
  0xb0   :  { %v83_v42 = vadd.f32 1e-06, %v81_v41 }
  0xb2   :  { %2186 = vrsqrt.f32 %v83_v42 }
  0xbb   :  { %v2185_v43 = vpop.eup %2184 }
  0xbc   :  { %v86_v45 = vmul.f32 %v2185_v43, %v2413_v0 }
  0xbe   :  { %v94_v46 = vmul.f32 %v1942_v44, %v86_v45 }
  0xbf   :  { %v2187_v47 = vpop.eup %2186 }
  0xc0   :  { %193 = vmatmul.mubr.f32.vlgmr.msra.gmra.mxu0 %v94_v46  ;;  %v87_v48 = vmul.f32 %v2187_v47, %v2418_v1 }
  0xc1   :  { %198 = vmatprep.mubr.f32.mxu0 %v2318_v27 }
  0xc2   :  { %v95_v49 = vmul.f32 %v1942_v44, %v87_v48 }
  0xc4   :  { %199 = vmatmul.mubr.f32.gmra.mxu0 %v95_v49 }
 0x180   :  { %v2527_v50 = vpop.f32.mrf.mxu0 }
 0x181   :  { %v337_v51 = vmul.f32 %v2527_v50, %v2527_v50 }
 0x182   :  { %v196_v52 = vpop.f32.mrf.mxu0 }
 0x183   :  { %345 = vrot.lane.b32.xlu1 %v337_v51, %s2319_s1  ;;  %v338_v54 = vmul.f32 %v196_v52, %v196_v52 }
 0x184   :  { %v2532_v53 = vpop.f32.mrf.mxu0 }
 0x185   :  { %v339_v55 = vmul.f32 %v2532_v53, %v2532_v53 }
 0x186   :  { %v2536_v56 = vpop.f32.mrf.mxu0 }
 0x187   :  { %347 = vrot.lane.b32.xlu1 %v338_v54, %s2319_s1  ;;  %349 = vrot.lane.b32.xlu0 %v339_v55, %s2319_s1  ;;  %v340_v57 = vmul.f32 %v2536_v56, %v2536_v56 }
 0x18b   :  { %351 = vrot.lane.b32.xlu1 %v340_v57, %s2319_s1 }
 0x1f5   :  { %v346_v58 = vpop.permute.xlu1 %345 }
 0x1f9   :  { %v348_v59 = vpop.permute.xlu1 %347  ;;  %v350_v62 = vpop.permute.xlu0 %349 }
 0x1fa   :  { %v354_v60 = vsel %vm353_vm0, %v346_v58, %v348_v59 }
 0x1fb   :  { %v359_v61 = vsel %vm358_vm1, %v354_v60, 0.0 }
 0x1fc   :  { %360 = vadd.xlane.f32.xlu1 %v359_v61 }
 0x1fd   :  { %v352_v63 = vpop.permute.xlu1 %351 }
 0x1fe   :  { %v355_v0 = vsel %vm353_vm0, %v350_v62, %v352_v63 }
 0x1ff   :  { %v362_v1 = vsel %vm358_vm1, %v355_v0, 0.0 }
 0x200   :  { %363 = vadd.xlane.f32.xlu0 %v362_v1 }
 0x20d   :  { %381 = vrot.lane.b32.xlu1 %v1943_v2, %s2320_s19  ;;  %s2322_s19 = smov 96  }
 0x285   :  { %v361_v7 = vpop.xlane.xlu1 %360 }
 0x286   :  { %v366_v8 = vmul.f32 0.015625, %v361_v7 }
 0x288   :  { %v368_v9 = vadd.f32 1e-06, %v366_v8 }
 0x289   :  { %v364_v10 = vpop.xlane.xlu0 %363  ;;  %v382_v18 = vpop.permute.xlu1 %381 }
 0x28a   :  { %2188 = vrsqrt.f32 %v368_v9  ;;  %v367_v11 = vmul.f32 0.015625, %v364_v10 }
 0x28c   :  { %v369_v12 = vadd.f32 1e-06, %v367_v11 }
 0x28e   :  { %2190 = vrsqrt.f32 %v369_v12 }
 0x297   :  { %v2189_v17 = vpop.eup %2188 }
 0x298   :  { %v373_v19 = vmul.f32 %v2189_v17, %v196_v52  ;;  %v372_v20 = vmul.f32 %v2189_v17, %v2527_v50 }
 0x29a   :  { %v385_v21 = vmul.f32 %v382_v18, %v373_v19  ;;  %v384_v22 = vmul.f32 %v382_v18, %v372_v20 }
 0x29b   :  { %v2191_v23 = vpop.eup %2190 }
 0x29c   :  { %402 = vrot.lane.b32.xlu1 %v385_v21, %s2319_s1  ;;  %400 = vrot.lane.b32.xlu0 %v384_v22, %s2319_s1  ;;  %v374_v24 = vmul.f32 %v2191_v23, %v2532_v53  ;;  %v375_v28 = vmul.f32 %v2191_v23, %v2536_v56 }
 0x29e   :  { %v386_v26 = vmul.f32 %v382_v18, %v374_v24  ;;  %v387_v30 = vmul.f32 %v382_v18, %v375_v28 }
 0x2a0   :  { %404 = vrot.lane.b32.xlu1 %v386_v26, %s2319_s1  ;;  %273 = vrot.lane.b32.xlu0 %v2578_v25, %s2321_s2 }
 0x2a4   :  { %406 = vrot.lane.b32.xlu1 %v387_v30, %s2319_s1  ;;  %267 = vrot.lane.b32.xlu0 %v206_v29, %s2322_s19  ;;  %s2323_s1 = smov 124  }
 0x2a8   :  { %275 = vrot.lane.b32.xlu1 %v208_v31, %s2321_s2 }
 0x2ac   :  { %301 = vrot.lane.b32.xlu1 %v206_v29, %s2321_s2 }
 0x2b0   :  { %299 = vrot.lane.b32.xlu1 %v205_v32, %s2321_s2 }
 0x2b4   :  { %293 = vrot.lane.b32.xlu1 %v208_v31, %s2322_s19 }
 0x30e   :  { %v403_v33 = vpop.permute.xlu1 %402  ;;  %v401_v34 = vpop.permute.xlu0 %400 }
 0x30f   :  { %v408_v35 = vsel %vm353_vm0, %v401_v34, %v403_v33 }
 0x310   :  { %2083 = vmatprep.mubr.msk.f32.mxu1 %vm358_vm1, %v408_v35 }
 0x312   :  { %v405_v36 = vpop.permute.xlu1 %404  ;;  %v274_v43 = vpop.permute.xlu0 %273 }
 0x313   :  { %v279_v44 = vmul.f32 %v274_v43, %v2527_v50 }
 0x316   :  { %v407_v37 = vpop.permute.xlu1 %406  ;;  %v268_v47 = vpop.permute.xlu0 %267 }
 0x317   :  { %v409_v38 = vsel %vm353_vm0, %v405_v36, %v407_v37  ;;  %v272_v48 = vmul.f32 %v268_v47, %v2532_v53  ;;  %v2676_v47 = vld [vmem:[%s2997_s11 + $0x8] sm:$0xff] }
 0x318   :  { %2084 = vmatmul.mubr.msk.f32.vlgmr.msra.gmra.mxu1 %vm358_vm1, %v409_v38 }
 0x31a   :  { %v276_v39 = vpop.permute.xlu1 %275 }
 0x31b   :  { %v280_v40 = vmul.f32 %v276_v39, %v2532_v53 }
 0x31d   :  { %285 = vrot.lane.b32.xlu0 %v280_v40, %s2323_s1 }
 0x31e   :  { %v302_v41 = vpop.permute.xlu1 %301 }
 0x31f   :  { %v306_v42 = vmul.f32 %v302_v41, %v2532_v53 }
 0x321   :  { %311 = vrot.lane.b32.xlu1 %v306_v42, %s2323_s1  ;;  %265 = vrot.lane.b32.xlu0 %v205_v32, %s2322_s19 }
 0x322   :  { %v300_v45 = vpop.permute.xlu1 %299 }
 0x323   :  { %v305_v46 = vmul.f32 %v300_v45, %v2527_v50 }
 0x325   :  { %291 = vrot.lane.b32.xlu1 %v2578_v25, %s2322_s19  ;;  %283 = vrot.lane.b32.xlu0 %v279_v44, %s2323_s1 }
 0x326   :  { %v294_v49 = vpop.permute.xlu1 %293 }
 0x327   :  { %v298_v54 = vmul.f32 %v294_v49, %v2532_v53 }
 0x329   :  { %309 = vrot.lane.b32.xlu1 %v305_v46, %s2323_s1  ;;  %221 = vrot.lane.b32.xlu0 %v2578_v25, %s2324_s9 }
 0x32d   :  { %223 = vrot.lane.b32.xlu1 %v208_v31, %s2324_s9  ;;  %247 = vrot.lane.b32.xlu0 %v205_v32, %s2324_s9 }
 0x331   :  { %249 = vrot.lane.b32.xlu1 %v206_v29, %s2324_s9 }
 0x38f   :  { %v286_v51 = vpop.permute.xlu0 %285 }
 0x390   :  { %v290_v52 = vsub.f32 %v272_v48, %v286_v51  ;;  %v2681_v51 = vld [vmem:[%s2997_s11] sm:$0xff]  ;;  %s2330_s11 = smov 76  }
 0x392   :  { %321 = vrot.lane.b32.xlu0 %v290_v52, %s2314_s25 }
 0x393   :  { %v312_v55 = vpop.permute.xlu1 %311  ;;  %v266_v56 = vpop.permute.xlu0 %265 }
 0x394   :  { %v316_v57 = vadd.f32 %v312_v55, %v298_v54  ;;  %v271_v60 = vmul.f32 %v266_v56, %v2527_v50 }
 0x396   :  { %329 = vrot.lane.b32.xlu1 %v316_v57, %s2325_s10  ;;  %211 = vrot.lane.b32.xlu0 %v205_v32, %s2326_s22 }
 0x397   :  { %v292_v58 = vpop.permute.xlu1 %291  ;;  %v284_v59 = vpop.permute.xlu0 %283 }
 0x398   :  { %v297_v61 = vmul.f32 %v292_v58, %v2527_v50  ;;  %v289_v0 = vsub.f32 %v271_v60, %v284_v59 }
 0x39a   :  { %213 = vrot.lane.b32.xlu1 %v206_v29, %s2326_s22  ;;  %239 = vrot.lane.b32.xlu0 %v2578_v25, %s2326_s22 }
 0x39b   :  { %v310_v62 = vpop.permute.xlu1 %309  ;;  %v222_v63 = vpop.permute.xlu0 %221 }
 0x39c   :  { %v315_v1 = vadd.f32 %v310_v62, %v297_v61  ;;  %v227_v3 = vmul.f32 %v222_v63, %v2527_v50 }
 0x39e   :  { %327 = vrot.lane.b32.xlu0 %v315_v1, %s2325_s10  ;;  %319 = vrot.lane.b32.xlu1 %v289_v0, %s2314_s25 }
 0x39f   :  { %v224_v2 = vpop.permute.xlu1 %223  ;;  %v248_v4 = vpop.permute.xlu0 %247 }
 0x3a0   :  { %v228_v5 = vmul.f32 %v224_v2, %v2532_v53  ;;  %v253_v6 = vmul.f32 %v248_v4, %v2527_v50 }
 0x3a2   :  { %241 = vrot.lane.b32.xlu0 %v208_v31, %s2326_s22  ;;  %231 = vrot.lane.b32.xlu1 %v227_v3, %s2327_s23 }
 0x3a3   :  { %v250_v7 = vpop.permute.xlu1 %249 }
 0x3a4   :  { %v254_v8 = vmul.f32 %v250_v7, %v2532_v53 }
 0x3a6   :  { %233 = vrot.lane.b32.xlu1 %v228_v5, %s2327_s23  ;;  %257 = vrot.lane.b32.xlu0 %v253_v6, %s2327_s23 }
 0x3aa   :  { %259 = vrot.lane.b32.xlu1 %v254_v8, %s2327_s23 }
 0x3d8   :  { %v2647_v32 = vpop.f32.mrf.mxu1 }
 0x3da   :  { %v2656_v35 = vpop.f32.mrf.mxu1 }
 0x404   :  { %v322_v9 = vpop.permute.xlu0 %321 }
 0x408   :  { %v330_v10 = vpop.permute.xlu1 %329  ;;  %v212_v11 = vpop.permute.xlu0 %211 }
 0x409   :  { %v335_v12 = vsel %vm333_vm2, %v322_v9, %v330_v10  ;;  %v217_v18 = vmul.f32 %v212_v11, %v2527_v50 }
 0x40a   :  { %517 = vrot.lane.b32.xlu0 %v335_v12, %s2328_s24 }
 0x40c   :  { %v214_v13 = vpop.permute.xlu1 %213  ;;  %v240_v14 = vpop.permute.xlu0 %239 }
 0x40d   :  { %v218_v22 = vmul.f32 %v214_v13, %v2532_v53  ;;  %v245_v23 = vmul.f32 %v240_v14, %v2527_v50 }
 0x410   :  { %v320_v15 = vpop.permute.xlu1 %319  ;;  %v328_v16 = vpop.permute.xlu0 %327 }
 0x411   :  { %v334_v17 = vsel %vm333_vm2, %v320_v15, %v328_v16 }
 0x412   :  { %515 = vrot.lane.b32.xlu1 %v334_v17, %s2328_s24 }
 0x414   :  { %v232_v19 = vpop.permute.xlu1 %231  ;;  %v242_v20 = vpop.permute.xlu0 %241 }
 0x415   :  { %v2630_v21 = vsub.f32 %v217_v18, %v232_v19  ;;  %v246_v29 = vmul.f32 %v242_v20, %v2532_v53 }
 0x417   :  { %493 = vrot.lane.b32.xlu0 %v2630_v21, %s2324_s9 }
 0x418   :  { %v234_v24 = vpop.permute.xlu1 %233  ;;  %v258_v25 = vpop.permute.xlu0 %257 }
 0x419   :  { %v2636_v26 = vsub.f32 %v218_v22, %v234_v24  ;;  %v2638_v28 = vadd.f32 %v258_v25, %v245_v23 }
 0x41b   :  { %495 = vrot.lane.b32.xlu1 %v2636_v26, %s2324_s9  ;;  %501 = vrot.lane.b32.xlu0 %v2638_v28, %s2329_s26 }
 0x41c   :  { %v260_v30 = vpop.permute.xlu1 %259 }
 0x41d   :  { %v2644_v31 = vadd.f32 %v260_v30, %v246_v29 }
 0x41f   :  { %503 = vrot.lane.b32.xlu1 %v2644_v31, %s2329_s26 }
 0x47c   :  { %v2649_v33 = vpop.permute.xlu0 %517 }
 0x47d   :  { %v522_v34 = vsel %vm507_vm3, %v2647_v32, %v2649_v33 }
 0x47e   :  { %2086 = vmatprep.subr.msk.mxu1 %vm353_vm0, %v522_v34 }
 0x47f   :  { %2087 = vmatpush3.xpose.msk.msra.mxu1 %vm353_vm0, %v522_v34 }
 0x484   :  { %v2658_v36 = vpop.permute.xlu1 %515 }
 0x485   :  { %v521_v37 = vsel %vm507_vm3, %v2656_v35, %v2658_v36 }
 0x486   :  { %2088 = vmatprep.subr.msk.mxu1 %vm353_vm0, %v521_v37 }
 0x487   :  { %2089 = vmatpush3.xpose.msk.msra.mxu1 %vm353_vm0, %v521_v37 }
 0x489   :  { %v494_v38 = vpop.permute.xlu0 %493 }
 0x48a   :  { %v508_v39 = vsel %vm507_vm3, %v2527_v50, %v494_v38 }
 0x48d   :  { %v496_v40 = vpop.permute.xlu1 %495  ;;  %v502_v41 = vpop.permute.xlu0 %501 }
 0x48e   :  { %v511_v42 = vsel %vm510_vm4, %v508_v39, %v502_v41  ;;  %v509_v43 = vsel %vm507_vm3, %v2532_v53, %v496_v40 }
 0x48f   :  { %2090 = vmatprep.mubr.msk.f32.mxu1 %vm353_vm0, %v511_v42 }
 0x491   :  { %v504_v44 = vpop.permute.xlu1 %503 }
 0x492   :  { %v512_v45 = vsel %vm510_vm4, %v509_v43, %v504_v44 }
 0x493   :  { %2091 = vmatmul.mubr.msk.f32.vlgmr.msra.gmra.mxu1 %vm353_vm0, %v512_v45 }
 0x553   :  { %v2092_v46 = vpop.f32.mrf.mxu1 }
 0x554   :  { %v611_v48 = vmul.f32 0.20412415, %v2092_v46 }
 0x555   :  { %v601_v49 = vpop.f32.mrf.mxu1 }
 0x556   :  { %v610_v52 = vmul.f32 0.20412415, %v601_v49  ;;  %v613_v54 = vadd.f32 %v611_v48, %v2676_v47 }
 0x558   :  { %v617_v55 = vsel %vm507_vm3, %v613_v54, -inf  ;;  %v612_v56 = vadd.f32 %v610_v52, %v2681_v51 }
 0x559   :  { %618 = vmax.xlane.f32.xlu1 %v617_v55 }
 0x55a   :  { %v614_v57 = vsel %vm507_vm3, %v612_v56, -inf }
 0x55b   :  { %615 = vmax.xlane.f32.xlu0 %v614_v57 }
 0x56a   :  { %640 = vrot.lane.b32.xlu1 %v2647_v32, %s2326_s22 }
 0x56e   :  { %751 = vrot.lane.b32.xlu1 %v2647_v32, %s2327_s23 }
 0x571   :  { %638 = vrot.lane.b32.xlu0 %v2656_v35, %s2326_s22 }
 0x572   :  { %749 = vrot.lane.b32.xlu1 %v2656_v35, %s2327_s23 }
 0x575   :  { %727 = vrot.lane.b32.xlu0 %v2527_v50, %s2327_s23 }
 0x576   :  { %733 = vrot.lane.b32.xlu1 %v2630_v21, %s2330_s11 }
 0x579   :  { %729 = vrot.lane.b32.xlu0 %v2532_v53, %s2327_s23 }
 0x57a   :  { %735 = vrot.lane.b32.xlu1 %v2636_v26, %s2330_s11 }
 0x57d   :  { %739 = vrot.lane.b32.xlu0 %v2638_v28, %s2324_s9 }
 0x57e   :  { %981 = vrot.lane.b32.xlu1 %v2647_v32, %s2322_s19 }
 0x581   :  { %741 = vrot.lane.b32.xlu0 %v2644_v31, %s2324_s9 }
 0x582   :  { %979 = vrot.lane.b32.xlu1 %v2656_v35, %s2322_s19 }
 0x585   :  { %957 = vrot.lane.b32.xlu0 %v2527_v50, %s2322_s19 }
 0x586   :  { %963 = vrot.lane.b32.xlu1 %v2630_v21, %s2331_s30 }
 0x58a   :  { %965 = vrot.lane.b32.xlu1 %v2636_v26, %s2331_s30 }
 0x58e   :  { %1211 = vrot.lane.b32.xlu1 %v2647_v32, %s2324_s9 }
 0x592   :  { %1209 = vrot.lane.b32.xlu1 %v2656_v35, %s2324_s9 }
 0x596   :  { %1193 = vrot.lane.b32.xlu1 %v2630_v21, %s2332_s15 }
 0x59a   :  { %1195 = vrot.lane.b32.xlu1 %v2636_v26, %s2332_s15 }
 0x59e   :  { %1201 = vrot.lane.b32.xlu1 %v2644_v31, %s2331_s30 }
 0x5e2   :  { %v619_v58 = vpop.xlane.xlu1 %618 }
 0x5e3   :  { %v621_v59 = vsub.f32 %v613_v54, %v619_v58 }
 0x5e4   :  { %v616_v60 = vpop.xlane.xlu0 %615 }
 0x5e5   :  { %v624_v61 = vmul.f32 1.442695, %v621_v59  ;;  %v620_v62 = vsub.f32 %v612_v56, %v616_v60 }
 0x5e6   :  { %v641_v63 = vpop.permute.xlu1 %640 }
 0x5e7   :  { %2192 = vpow2.f32 %v624_v61  ;;  %v622_v0 = vmul.f32 1.442695, %v620_v62  ;;  %2093 = vmatprep.subr.mxu1 %v641_v63 }
 0x5e8   :  { %2094 = vmatpush3.msra.mxu1 %v641_v63  ;;  %v639_v1 = vpop.permute.xlu0 %638 }
 0x5e9   :  { %2194 = vpow2.f32 %v622_v0  ;;  %2095 = vmatprep.subr.mxu1 %v639_v1 }
 0x5ea   :  { %v752_v2 = vpop.permute.xlu1 %751  ;;  %2096 = vmatpush3.msra.mxu1 %v639_v1 }
 0x5eb   :  { %v756_v3 = vsel %vm507_vm3, %v752_v2, %v2649_v33 }
 0x5ec   :  { %2100 = vmatprep.subr.msk.mxu1 %vm353_vm0, %v756_v3  ;;  %v728_v8 = vpop.permute.xlu0 %727 }
 0x5ee   :  { %v750_v9 = vpop.permute.xlu1 %749 }
 0x5f0   :  { %v730_v10 = vpop.permute.xlu0 %729 }
 0x5f2   :  { %v734_v11 = vpop.permute.xlu1 %733 }
 0x5f3   :  { %v745_v25 = vsel %vm507_vm3, %v728_v8, %v734_v11 }
 0x5f4   :  { %v2193_v4 = vpop.eup %2192  ;;  %v740_v12 = vpop.permute.xlu0 %739 }
 0x5f5   :  { %v629_v5 = vsel %vm507_vm3, %v2193_v4, 0.0  ;;  %v747_v30 = vsel %vm510_vm4, %v745_v25, %v740_v12 }
 0x5f6   :  { %v2195_v6 = vpop.eup %2194  ;;  %630 = vadd.xlane.f32.xlu0 %v629_v5  ;;  %v736_v13 = vpop.permute.xlu1 %735 }
 0x5f7   :  { %v626_v7 = vsel %vm507_vm3, %v2195_v6, 0.0  ;;  %v746_v37 = vsel %vm507_vm3, %v730_v10, %v736_v13 }
 0x5f8   :  { %v742_v14 = vpop.permute.xlu0 %741 }
 0x5f9   :  { %v748_v40 = vsel %vm510_vm4, %v746_v37, %v742_v14 }
 0x5fa   :  { %627 = vadd.xlane.f32.xlu0 %v626_v7  ;;  %v982_v15 = vpop.permute.xlu1 %981 }
 0x5fb   :  { %v986_v39 = vsel %vm507_vm3, %v982_v15, %v2649_v33 }
 0x5fc   :  { %v958_v16 = vpop.permute.xlu0 %957 }
 0x5fe   :  { %v980_v18 = vpop.permute.xlu1 %979 }
 0x5ff   :  { %v985_v44 = vsel %vm507_vm3, %v980_v18, %v2658_v36 }
 0x610   :  { %959 = vrot.lane.b32.xlu0 %v2532_v53, %s2322_s19 }
 0x614   :  { %969 = vrot.lane.b32.xlu0 %v2638_v28, %s2330_s11 }
 0x618   :  { %971 = vrot.lane.b32.xlu0 %v2644_v31, %s2330_s11  ;;  %v755_v31 = vsel %vm507_vm3, %v750_v9, %v2658_v36 }
 0x61c   :  { %1187 = vrot.lane.b32.xlu0 %v2527_v50, %s2324_s9  ;;  %v964_v50 = vpop.permute.xlu1 %963 }
 0x61d   :  { %v975_v41 = vsel %vm507_vm3, %v958_v16, %v964_v50 }
 0x620   :  { %1189 = vrot.lane.b32.xlu0 %v2532_v53, %s2324_s9  ;;  %v966_v21 = vpop.permute.xlu1 %965 }
 0x624   :  { %1199 = vrot.lane.b32.xlu0 %v2638_v28, %s2331_s30  ;;  %v1212_v28 = vpop.permute.xlu1 %1211 }
 0x625   :  { %v1216_v46 = vsel %vm507_vm3, %v1212_v28, %v2649_v33 }
 0x628   :  { %v1210_v38 = vpop.permute.xlu1 %1209 }
 0x629   :  { %v1215_v57 = vsel %vm507_vm3, %v1210_v38, %v2658_v36 }
 0x62c   :  { %v1194_v45 = vpop.permute.xlu1 %1193 }
 0x630   :  { %v1196_v55 = vpop.permute.xlu1 %1195 }
 0x634   :  { %v1202_v58 = vpop.permute.xlu1 %1201 }
 0x67f   :  { %v631_v17 = vpop.xlane.xlu0 %630 }
 0x680   :  { %2196 = vrcp.f32 %v631_v17 }
 0x683   :  { %v628_v19 = vpop.xlane.xlu0 %627 }
 0x684   :  { %2198 = vrcp.f32 %v628_v19 }
 0x687   :  { %v960_v20 = vpop.permute.xlu0 %959 }
 0x688   :  { %v976_v49 = vsel %vm507_vm3, %v960_v20, %v966_v21 }
 0x68b   :  { %v970_v53 = vpop.permute.xlu0 %969 }
 0x68c   :  { %v977_v43 = vsel %vm510_vm4, %v975_v41, %v970_v53 }
 0x68d   :  { %v2197_v22 = vpop.eup %2196 }
 0x68e   :  { %v635_v29 = vmul.f32 %v2197_v22, %v2193_v4 }
 0x68f   :  { %v972_v23 = vpop.permute.xlu0 %971 }
 0x690   :  { %v978_v52 = vsel %vm510_vm4, %v976_v49, %v972_v23 }
 0x691   :  { %v2199_v24 = vpop.eup %2198 }
 0x692   :  { %v634_v26 = vmul.f32 %v2199_v24, %v2195_v6 }
 0x693   :  { %v1188_v34 = vpop.permute.xlu0 %1187 }
 0x694   :  { %2097 = vmatprep.mubr.msk.f32.mxu1 %vm507_vm3, %v634_v26  ;;  %v1205_v54 = vsel %vm507_vm3, %v1188_v34, %v1194_v45 }
 0x695   :  { %2098 = vmatmul.mubr.msk.f32.vlgmr.msra.gmra.mxu1 %vm507_vm3, %v635_v29 }
 0x696   :  { %2101 = vmatpush3.xpose.msk.msra.mxu1 %vm353_vm0, %v756_v3  ;;  %2104 = vmatprep.mubr.msk.f32.mxu1 %vm353_vm0, %v747_v30 }
 0x697   :  { %2102 = vmatprep.subr.msk.mxu1 %vm353_vm0, %v755_v31  ;;  %v1190_v42 = vpop.permute.xlu0 %1189 }
 0x698   :  { %v1206_v33 = vsel %vm507_vm3, %v1190_v42, %v1196_v55 }
 0x699   :  { %v1208_v59 = vsel %vm510_vm4, %v1206_v33, %v1202_v58 }
 0x69a   :  { %2103 = vmatpush3.xpose.msk.msra.mxu1 %vm353_vm0, %v755_v31 }
 0x69b   :  { %2114 = vmatprep.subr.msk.mxu1 %vm353_vm0, %v986_v39  ;;  %v1200_v48 = vpop.permute.xlu0 %1199 }
 0x69c   :  { %v1207_v56 = vsel %vm510_vm4, %v1205_v54, %v1200_v48 }
 0x69d   :  { %2105 = vmatmul.mubr.msk.f32.vlgmr.msra.gmra.mxu1 %vm353_vm0, %v748_v40 }
 0x69e   :  { %2115 = vmatpush3.xpose.msk.msra.mxu1 %vm353_vm0, %v986_v39  ;;  %2118 = vmatprep.mubr.msk.f32.mxu1 %vm353_vm0, %v977_v43 }
 0x69f   :  { %2116 = vmatprep.subr.msk.mxu1 %vm353_vm0, %v985_v44 }
 0x6a2   :  { %2117 = vmatpush3.xpose.msk.msra.mxu1 %vm353_vm0, %v985_v44 }
 0x6a3   :  { %2128 = vmatprep.subr.msk.mxu1 %vm353_vm0, %v1216_v46 }
 0x6a5   :  { %2119 = vmatmul.mubr.msk.f32.vlgmr.msra.gmra.mxu1 %vm353_vm0, %v978_v52 }
 0x6a6   :  { %2129 = vmatpush3.xpose.msk.msra.mxu1 %vm353_vm0, %v1216_v46  ;;  %2132 = vmatprep.mubr.msk.f32.mxu1 %vm353_vm0, %v1207_v56 }
 0x6a7   :  { %2130 = vmatprep.subr.msk.mxu1 %vm353_vm0, %v1215_v57 }
 0x6aa   :  { %2131 = vmatpush3.xpose.msk.msra.mxu1 %vm353_vm0, %v1215_v57 }
 0x6ad   :  { %2133 = vmatmul.mubr.msk.f32.vlgmr.msra.gmra.mxu1 %vm353_vm0, %v1208_v59 }
 0x755   :  { %v2783_v60 = vpop.f32.mrf.mxu1 }
 0x757   :  { %v2785_v61 = vpop.f32.mrf.mxu1 }
 0x75d   :  { %v2106_v36 = vpop.f32.mrf.mxu1 }
 0x75e   :  { %v845_v62 = vmul.f32 0.20412415, %v2106_v36 }
 0x75f   :  { %v835_v63 = vpop.f32.mrf.mxu1 }
 0x760   :  { %v844_v0 = vmul.f32 0.20412415, %v835_v63  ;;  %v847_v1 = vadd.f32 %v845_v62, %v2676_v47 }
 0x762   :  { %v851_v2 = vsel %vm507_vm3, %v847_v1, -inf  ;;  %v846_v3 = vadd.f32 %v844_v0, %v2681_v51 }
 0x763   :  { %852 = vmax.xlane.f32.xlu1 %v851_v2 }
 0x764   :  { %v848_v4 = vsel %vm507_vm3, %v846_v3, -inf }
 0x765   :  { %849 = vmax.xlane.f32.xlu0 %v848_v4  ;;  %v2120_v5 = vpop.f32.mrf.mxu1 }
 0x766   :  { %v1075_v6 = vmul.f32 0.20412415, %v2120_v5 }
 0x767   :  { %v1065_v7 = vpop.f32.mrf.mxu1 }
 0x768   :  { %v1074_v8 = vmul.f32 0.20412415, %v1065_v7  ;;  %v1077_v9 = vadd.f32 %v1075_v6, %v2676_v47 }
 0x76a   :  { %v1081_v10 = vsel %vm507_vm3, %v1077_v9, -inf  ;;  %v1076_v11 = vadd.f32 %v1074_v8, %v2681_v51 }
 0x76b   :  { %1082 = vmax.xlane.f32.xlu0 %v1081_v10 }
 0x76c   :  { %v1078_v14 = vsel %vm507_vm3, %v1076_v11, -inf }
 0x76d   :  { %v2134_v12 = vpop.f32.mrf.mxu1 }
 0x76e   :  { %v1305_v13 = vmul.f32 0.20412415, %v2134_v12 }
 0x76f   :  { %1079 = vmax.xlane.f32.xlu0 %v1078_v14  ;;  %v1295_v15 = vpop.f32.mrf.mxu1  ;;  %v1456_v14 = vld [vmem:[%s2989_s3 + $0x38] sm:$0xff] }
 0x770   :  { %v1304_v16 = vmul.f32 0.20412415, %v1295_v15  ;;  %v1307_v17 = vadd.f32 %v1305_v13, %v2676_v47  ;;  %v1455_v15 = vld [vmem:[%s2989_s3 + $0x30] sm:$0xff] }
 0x772   :  { %v1311_v18 = vsel %vm507_vm3, %v1307_v17, -inf  ;;  %v1306_v19 = vadd.f32 %v1304_v16, %v2681_v51  ;;  %v1454_v16 = vld [vmem:[%s2989_s3 + $0x28] sm:$0xff] }
 0x773   :  { %1312 = vmax.xlane.f32.xlu0 %v1311_v18 }
 0x774   :  { %v1308_v50 = vsel %vm507_vm3, %v1306_v19, -inf }
 0x775   :  { %1309 = vmax.xlane.f32.xlu1 %v1308_v50  ;;  %v1451_v50 = vld [vmem:[%s2989_s3 + $0x10] sm:$0xff] }
 0x786   :  { %872 = vrot.lane.b32.xlu1 %v2647_v32, %s2333_s16 }
 0x789   :  { %870 = vrot.lane.b32.xlu0 %v2656_v35, %s2333_s16 }
 0x78a   :  { %1102 = vrot.lane.b32.xlu1 %v2647_v32, %s2314_s25 }
 0x78e   :  { %1332 = vrot.lane.b32.xlu1 %v2647_v32, %s2328_s24 }
 0x7ec   :  { %v853_v47 = vpop.xlane.xlu1 %852 }
 0x7ed   :  { %v855_v20 = vsub.f32 %v847_v1, %v853_v47 }
 0x7ee   :  { %v850_v51 = vpop.xlane.xlu0 %849 }
 0x7ef   :  { %v858_v53 = vmul.f32 1.442695, %v855_v20  ;;  %v854_v21 = vsub.f32 %v846_v3, %v850_v51  ;;  %v1450_v20 = vld [vmem:[%s2989_s3 + $0x8] sm:$0xff]  ;;  %v1449_v51 = vld [vmem:[%s2989_s3] sm:$0xff] }
 0x7f1   :  { %2200 = vpow2.f32 %v858_v53  ;;  %v856_v22 = vmul.f32 1.442695, %v854_v21 }
 0x7f3   :  { %2202 = vpow2.f32 %v856_v22 }
 0x7f4   :  { %v1083_v23 = vpop.xlane.xlu0 %1082 }
 0x7f5   :  { %v1085_v24 = vsub.f32 %v1077_v9, %v1083_v23 }
 0x7f7   :  { %v1088_v25 = vmul.f32 1.442695, %v1085_v24 }
 0x7f8   :  { %v1080_v26 = vpop.xlane.xlu0 %1079 }
 0x7f9   :  { %2204 = vpow2.f32 %v1088_v25  ;;  %v1084_v28 = vsub.f32 %v1076_v11, %v1080_v26 }
 0x7fb   :  { %v1086_v29 = vmul.f32 1.442695, %v1084_v28 }
 0x7fc   :  { %v1313_v30 = vpop.xlane.xlu0 %1312 }
 0x7fd   :  { %2206 = vpow2.f32 %v1086_v29  ;;  %v1315_v31 = vsub.f32 %v1307_v17, %v1313_v30  ;;  %v1453_v17 = vld [vmem:[%s2989_s3 + $0x20] sm:$0xff] }
 0x7fe   :  { %v2201_v34 = vpop.eup %2200  ;;  %v1310_v32 = vpop.xlane.xlu1 %1309 }
 0x7ff   :  { %v1318_v37 = vmul.f32 1.442695, %v1315_v31  ;;  %v1314_v38 = vsub.f32 %v1306_v19, %v1310_v32  ;;  %v863_v39 = vsel %vm507_vm3, %v2201_v34, 0.0  ;;  %v1452_v19 = vld [vmem:[%s2989_s3 + $0x18] sm:$0xff] }
 0x800   :  { %v2203_v40 = vpop.eup %2202  ;;  %864 = vadd.xlane.f32.xlu0 %v863_v39  ;;  %v871_v44 = vpop.permute.xlu0 %870 }
 0x801   :  { %2208 = vpow2.f32 %v1318_v37  ;;  %v1316_v41 = vmul.f32 1.442695, %v1314_v38  ;;  %v860_v42 = vsel %vm507_vm3, %v2203_v40, 0.0 }
 0x802   :  { %v873_v43 = vpop.permute.xlu1 %872  ;;  %861 = vadd.xlane.f32.xlu1 %v860_v42  ;;  %v1623_v42 = vld [vmem:[#allocation2 + $0x1e0] sm:$0xff] }
 0x803   :  { %2210 = vpow2.f32 %v1316_v41  ;;  %2107 = vmatprep.subr.mxu0 %v873_v43  ;;  %v1626_v41 = vld [vmem:[#allocation2 + $0x1f8] sm:$0xff] }
 0x804   :  { %2108 = vmatpush3.msra.mxu0 %v873_v43  ;;  %v1620_v43 = vld [vmem:[#allocation2 + $0x1c8] sm:$0xff] }
 0x805   :  { %2109 = vmatprep.subr.mxu0 %v871_v44 }
 0x806   :  { %v2205_v45 = vpop.eup %2204  ;;  %v1103_v46 = vpop.permute.xlu1 %1102  ;;  %2110 = vmatpush3.msra.mxu0 %v871_v44  ;;  %v1622_v44 = vld [vmem:[#allocation2 + $0x1d8] sm:$0xff] }
 0x807   :  { %2121 = vmatprep.subr.mxu0 %v1103_v46  ;;  %v1093_v48 = vsel %vm507_vm3, %v2205_v45, 0.0 }
 0x808   :  { %1094 = vadd.xlane.f32.xlu0 %v1093_v48  ;;  %v1618_v48 = vld [vmem:[#allocation2 + $0x1b8] sm:$0xff] }
 0x80a   :  { %v2207_v49 = vpop.eup %2206  ;;  %v1333_v52 = vpop.permute.xlu1 %1332 }
 0x80b   :  { %2135 = vmatprep.subr.mxu1 %v1333_v52  ;;  %v1090_v54 = vsel %vm507_vm3, %v2207_v49, 0.0 }
 0x80c   :  { %2136 = vmatpush3.msra.mxu1 %v1333_v52  ;;  %1091 = vadd.xlane.f32.xlu1 %v1090_v54  ;;  %v1617_v52 = vld [vmem:[#allocation2 + $0x1b0] sm:$0xff]  ;;  %v1612_v54 = vld [vmem:[#allocation2 + $0x188] sm:$0xff] }
 0x80e   :  { %v2209_v55 = vpop.eup %2208 }
 0x80f   :  { %v1323_v56 = vsel %vm507_vm3, %v2209_v55, 0.0 }
 0x810   :  { %v2211_v57 = vpop.eup %2210  ;;  %1324 = vadd.xlane.f32.xlu0 %v1323_v56  ;;  %v1611_v56 = vld [vmem:[#allocation2 + $0x180] sm:$0xff] }
 0x811   :  { %v1320_v33 = vsel %vm507_vm3, %v2211_v57, 0.0 }
 0x812   :  { %1321 = vadd.xlane.f32.xlu1 %v1320_v33 }
 0x823   :  { %1330 = vrot.lane.b32.xlu1 %v2656_v35, %s2328_s24 }
 0x826   :  { %1100 = vrot.lane.b32.xlu0 %v2656_v35, %s2314_s25 }
 0x889   :  { %v865_v58 = vpop.xlane.xlu0 %864 }
 0x88a   :  { %2212 = vrcp.f32 %v865_v58  ;;  %v2244_v58 = vld [vmem:[%s2986_s0 + $0x8] sm:$0xff] }
 0x88b   :  { %v862_v59 = vpop.xlane.xlu1 %861 }
 0x88c   :  { %2214 = vrcp.f32 %v862_v59 }
 0x891   :  { %v1095_v36 = vpop.xlane.xlu0 %1094 }
 0x892   :  { %2216 = vrcp.f32 %v1095_v36 }
 0x895   :  { %v1092_v62 = vpop.xlane.xlu1 %1091 }
 0x896   :  { %2218 = vrcp.f32 %v1092_v62  ;;  %v2245_v62 = vld [vmem:[%s2986_s0] sm:$0xff] }
 0x897   :  { %v2213_v63 = vpop.eup %2212 }
 0x898   :  { %v869_v3 = vmul.f32 %v2213_v63, %v2201_v34 }
 0x899   :  { %v2215_v0 = vpop.eup %2214  ;;  %v1325_v1 = vpop.xlane.xlu0 %1324 }
 0x89a   :  { %v868_v2 = vmul.f32 %v2215_v0, %v2203_v40  ;;  %2220 = vrcp.f32 %v1325_v1  ;;  %v1624_v40 = vld [vmem:[#allocation2 + $0x1e8] sm:$0xff] }
 0x89b   :  { %v1322_v4 = vpop.xlane.xlu1 %1321 }
 0x89c   :  { %2222 = vrcp.f32 %v1322_v4  ;;  %2111 = vmatprep.mubr.msk.f32.mxu0 %vm507_vm3, %v868_v2  ;;  %v1608_v2 = vld [vmem:[#allocation2 + $0x168] sm:$0xff]  ;;  %v1607_v4 = vld [vmem:[#allocation2 + $0x160] sm:$0xff] }
 0x89d   :  { %2112 = vmatmul.mubr.msk.f32.vlgmr.msra.gmra.mxu0 %vm507_vm3, %v869_v3  ;;  %v1101_v35 = vpop.permute.xlu0 %1100  ;;  %v1610_v3 = vld [vmem:[#allocation2 + $0x178] sm:$0xff] }
 0x89e   :  { %2122 = vmatpush3.msra.mxu0 %v1103_v46  ;;  %v1616_v46 = vld [vmem:[#allocation2 + $0x1a8] sm:$0xff] }
 0x89f   :  { %2123 = vmatprep.subr.mxu0 %v1101_v35  ;;  %v1331_v5 = vpop.permute.xlu1 %1330  ;;  %v2217_v6 = vpop.eup %2216 }
 0x8a0   :  { %2124 = vmatpush3.msra.mxu0 %v1101_v35  ;;  %2137 = vmatprep.subr.mxu1 %v1331_v5  ;;  %v1099_v9 = vmul.f32 %v2217_v6, %v2205_v45  ;;  %v1621_v45 = vld [vmem:[#allocation2 + $0x1d0] sm:$0xff]  ;;  %v1606_v6 = vld [vmem:[#allocation2 + $0x158] sm:$0xff] }
 0x8a1   :  { %2138 = vmatpush3.msra.mxu1 %v1331_v5  ;;  %1627 = vmatprep.subr.mxu0 %v1624_v40  ;;  %v1609_v35 = vld [vmem:[#allocation2 + $0x170] sm:$0xff]  ;;  %v1604_v5 = vld [vmem:[#allocation2 + $0x148] sm:$0xff] }
 0x8a2   :  { %2142 = vmatprep.subr.mxu1 %v1456_v14  ;;  %v1573_v40 = vld [vmem:[#allocation2 + $0x50] sm:$0xff] }
 0x8a3   :  { %v2219_v7 = vpop.eup %2218 }
 0x8a4   :  { %v1098_v8 = vmul.f32 %v2219_v7, %v2207_v49  ;;  %v1615_v49 = vld [vmem:[#allocation2 + $0x1a0] sm:$0xff] }
 0x8a5   :  { %v1603_v7 = vld [vmem:[#allocation2 + $0x140] sm:$0xff] }
 0x8a6   :  { %2125 = vmatprep.mubr.msk.f32.mxu0 %vm507_vm3, %v1098_v8  ;;  %v1605_v8 = vld [vmem:[#allocation2 + $0x150] sm:$0xff] }
 0x8a7   :  { %2126 = vmatmul.mubr.msk.f32.vlgmr.msra.gmra.mxu0 %vm507_vm3, %v1099_v9  ;;  %v2221_v10 = vpop.eup %2220  ;;  %v1600_v9 = vld [vmem:[#allocation2 + $0x128] sm:$0xff] }
 0x8a8   :  { %1691 = vmatprep.mubr.f32.mxu0 %v2318_v27  ;;  %v1329_v13 = vmul.f32 %v2221_v10, %v2209_v55  ;;  %1628 = vmatpush1.msra.mxu0 %v1623_v42  ;;  %v1614_v55 = vld [vmem:[#allocation2 + $0x198] sm:$0xff] }
 0x8a9   :  { %v2223_v11 = vpop.eup %2222  ;;  %1629 = vmatprep.subr.mxu0 %v1620_v43  ;;  %v1602_v10 = vld [vmem:[#allocation2 + $0x138] sm:$0xff]  ;;  %v1569_v43 = vld [vmem:[#allocation2 + $0x30] sm:$0xff] }
 0x8aa   :  { %v1328_v12 = vmul.f32 %v2223_v11, %v2211_v57  ;;  %v1613_v57 = vld [vmem:[#allocation2 + $0x190] sm:$0xff]  ;;  %v1599_v11 = vld [vmem:[#allocation2 + $0x120] sm:$0xff]  ;;  %v1570_v42 = vld [vmem:[#allocation2 + $0x38] sm:$0xff] }
 0x8ac   :  { %2139 = vmatprep.mubr.msk.f32.mxu1 %vm507_vm3, %v1328_v12  ;;  %v1601_v12 = vld [vmem:[#allocation2 + $0x130] sm:$0xff] }
 0x8ad   :  { %2140 = vmatmul.mubr.msk.f32.vlgmr.msra.gmra.mxu1 %vm507_vm3, %v1329_v13  ;;  %v1596_v13 = vld [vmem:[#allocation2 + $0x108] sm:$0xff] }
 0x8ae   :  { %2143 = vmatpush3.msra.mxu1 %v1456_v14  ;;  %v1598_v14 = vld [vmem:[#allocation2 + $0x118] sm:$0xff] }
 0x8af   :  { %2144 = vmatprep.subr.mxu1 %v1455_v15 }
 0x8b0   :  { %2145 = vmatpush3.msra.mxu1 %v1455_v15  ;;  %v1595_v15 = vld [vmem:[#allocation2 + $0x100] sm:$0xff] }
 0x8b1   :  { %2146 = vmatprep.subr.mxu1 %v1454_v16 }
 0x8b2   :  { %2147 = vmatpush3.msra.mxu1 %v1454_v16  ;;  %v1597_v16 = vld [vmem:[#allocation2 + $0x110] sm:$0xff] }
 0x8b3   :  { %2148 = vmatprep.subr.mxu1 %v1453_v17 }
 0x8b4   :  { %2149 = vmatpush3.msra.mxu1 %v1453_v17  ;;  %v1592_v17 = vld [vmem:[#allocation2 + $0xe8] sm:$0xff] }
 0x8b5   :  { %2150 = vmatprep.subr.mxu1 %v1452_v19 }
 0x8b6   :  { %2151 = vmatpush3.msra.mxu1 %v1452_v19  ;;  %v1591_v19 = vld [vmem:[#allocation2 + $0xe0] sm:$0xff] }
 0x8b7   :  { %2152 = vmatprep.subr.mxu1 %v1451_v50 }
 0x8b8   :  { %2153 = vmatpush3.msra.mxu1 %v1451_v50  ;;  %v1593_v50 = vld [vmem:[#allocation2 + $0xf0] sm:$0xff] }
 0x8b9   :  { %2154 = vmatprep.subr.mxu1 %v1450_v20 }
 0x8ba   :  { %2155 = vmatpush3.msra.mxu1 %v1450_v20  ;;  %v1590_v20 = vld [vmem:[#allocation2 + $0xd8] sm:$0xff] }
 0x8bb   :  { %2156 = vmatprep.subr.mxu1 %v1449_v51 }
 0x8bc   :  { %2157 = vmatpush3.msra.mxu1 %v1449_v51  ;;  %v1587_v51 = vld [vmem:[#allocation2 + $0xc0] sm:$0xff] }
 0x8bd   :  { %1704 = vmatprep.subr.mxu1 %v1626_v41  ;;  %v1568_v41 = vld [vmem:[#allocation2 + $0x28] sm:$0xff] }
 0x95d   :  { %v2113_v18 = vpop.f32.mrf.mxu0 }
 0x95e   :  { %1421 = vrot.lane.b32.xlu1 %v2113_v18, %s2328_s24  ;;  %v1594_v18 = vld [vmem:[#allocation2 + $0xf8] sm:$0xff] }
 0x95f   :  { %v948_v47 = vpop.f32.mrf.mxu0 }
 0x960   :  { %1419 = vrot.lane.b32.xlu0 %v948_v47, %s2328_s24  ;;  %v1588_v47 = vld [vmem:[#allocation2 + $0xc8] sm:$0xff] }
 0x967   :  { %v2127_v53 = vpop.f32.mrf.mxu0 }
 0x968   :  { %1429 = vrot.lane.b32.xlu1 %v2127_v53, %s2314_s25  ;;  %v1589_v53 = vld [vmem:[#allocation2 + $0xd0] sm:$0xff] }
 0x969   :  { %v1178_v21 = vpop.f32.mrf.mxu0 }
 0x96a   :  { %1427 = vrot.lane.b32.xlu0 %v1178_v21, %s2314_s25  ;;  %v1584_v21 = vld [vmem:[#allocation2 + $0xa8] sm:$0xff] }
 0x96d   :  { %v2141_v22 = vpop.f32.mrf.mxu1 }
 0x96e   :  { %1437 = vrot.lane.b32.xlu1 %v2141_v22, %s2333_s16  ;;  %v1586_v22 = vld [vmem:[#allocation2 + $0xb8] sm:$0xff] }
 0x96f   :  { %v1408_v23 = vpop.f32.mrf.mxu1 }
 0x970   :  { %1435 = vrot.lane.b32.xlu0 %v1408_v23, %s2333_s16  ;;  %v1583_v23 = vld [vmem:[#allocation2 + $0xa0] sm:$0xff] }
 0x9d0   :  { %v1422_v24 = vpop.permute.xlu1 %1421 }
 0x9d1   :  { %v1442_v31 = vsel %vm507_vm3, %v2783_v60, %v1422_v24  ;;  %v1619_v60 = vld [vmem:[#allocation2 + $0x1c0] sm:$0xff]  ;;  %v1585_v24 = vld [vmem:[#allocation2 + $0xb0] sm:$0xff] }
 0x9d2   :  { %v1420_v25 = vpop.permute.xlu0 %1419  ;;  %1630 = vmatpush1.msra.mxu0 %v1619_v60  ;;  %v1566_v60 = vld [vmem:[#allocation2 + $0x18] sm:$0xff] }
 0x9d3   :  { %v1441_v29 = vsel %vm507_vm3, %v2785_v61, %v1420_v25  ;;  %v1625_v61 = vld [vmem:[#allocation2 + $0x1f0] sm:$0xff]  ;;  %1631 = vmatprep.subr.mxu0 %v1616_v46  ;;  %v1580_v25 = vld [vmem:[#allocation2 + $0x88] sm:$0xff] }
 0x9d4   :  { %1632 = vmatpush1.msra.mxu0 %v1615_v49  ;;  %v1565_v46 = vld [vmem:[#allocation2 + $0x10] sm:$0xff] }
 0x9d5   :  { %1633 = vmatprep.subr.mxu0 %v1612_v54 }
 0x9d6   :  { %1634 = vmatpush1.msra.mxu0 %v1611_v56 }
 0x9d7   :  { %1635 = vmatprep.subr.mxu0 %v1608_v2  ;;  %v1844_v2 = vld [vmem:[%s2991_s5 + $0xf8] sm:$0xff] }
 0x9d8   :  { %1636 = vmatpush1.msra.mxu0 %v1607_v4  ;;  %v1843_v4 = vld [vmem:[%s2991_s5 + $0xf0] sm:$0xff] }
 0x9d9   :  { %1637 = vmatprep.subr.mxu0 %v1604_v5  ;;  %v1826_v5 = vld [vmem:[%s2991_s5 + $0x68] sm:$0xff] }
 0x9da   :  { %v1430_v26 = vpop.permute.xlu1 %1429  ;;  %1638 = vmatpush1.msra.mxu0 %v1603_v7  ;;  %v1825_v7 = vld [vmem:[%s2991_s5 + $0x60] sm:$0xff] }
 0x9db   :  { %v1445_v37 = vsel %vm1443_vm5, %v1442_v31, %v1430_v26  ;;  %1639 = vmatprep.subr.mxu0 %v1600_v9  ;;  %v1582_v26 = vld [vmem:[#allocation2 + $0x98] sm:$0xff] }
 0x9dc   :  { %v1428_v28 = vpop.permute.xlu0 %1427  ;;  %1640 = vmatpush1.msra.mxu0 %v1599_v11  ;;  %v1578_v31 = vld [vmem:[#allocation2 + $0x78] sm:$0xff]  ;;  %v1823_v11 = vld [vmem:[%s2991_s5 + $0x50] sm:$0xff] }
 0x9dd   :  { %v1444_v34 = vsel %vm1443_vm5, %v1441_v29, %v1428_v28  ;;  %1641 = vmatprep.subr.mxu0 %v1596_v13  ;;  %v1579_v28 = vld [vmem:[#allocation2 + $0x80] sm:$0xff]  ;;  %v1581_v29 = vld [vmem:[#allocation2 + $0x90] sm:$0xff]  ;;  %v1824_v9 = vld [vmem:[%s2991_s5 + $0x58] sm:$0xff] }
 0x9de   :  { %1642 = vmatpush1.msra.mxu0 %v1595_v15  ;;  %v1822_v13 = vld [vmem:[%s2991_s5 + $0x48] sm:$0xff]  ;;  %v1821_v15 = vld [vmem:[%s2991_s5 + $0x40] sm:$0xff] }
 0x9df   :  { %1643 = vmatprep.subr.mxu0 %v1592_v17  ;;  %v1820_v17 = vld [vmem:[%s2991_s5 + $0x38] sm:$0xff] }
 0x9e0   :  { %v1438_v30 = vpop.permute.xlu1 %1437  ;;  %1644 = vmatpush1.msra.mxu0 %v1591_v19  ;;  %v1819_v19 = vld [vmem:[%s2991_s5 + $0x30] sm:$0xff] }
 0x9e1   :  { %v1448_v39 = vsel %vm1446_vm6, %v1445_v37, %v1438_v30  ;;  %1645 = vmatprep.subr.mxu0 %v1588_v47  ;;  %v1576_v30 = vld [vmem:[#allocation2 + $0x68] sm:$0xff] }
 0x9e2   :  { %v1436_v32 = vpop.permute.xlu0 %1435  ;;  %1646 = vmatpush1.msra.mxu0 %v1587_v51  ;;  %v1572_v37 = vld [vmem:[#allocation2 + $0x48] sm:$0xff]  ;;  %v1817_v51 = vld [vmem:[%s2991_s5 + $0x20] sm:$0xff] }
 0x9e3   :  { %v1447_v38 = vsel %vm1446_vm6, %v1444_v34, %v1436_v32  ;;  %1647 = vmatprep.subr.mxu0 %v1584_v21  ;;  %v1575_v34 = vld [vmem:[#allocation2 + $0x60] sm:$0xff]  ;;  %v1577_v32 = vld [vmem:[#allocation2 + $0x70] sm:$0xff]  ;;  %v1818_v47 = vld [vmem:[%s2991_s5 + $0x28] sm:$0xff] }
 0x9e4   :  { %2158 = vmatprep.mubr.msk.f32.mxu1 %vm358_vm1, %v1447_v38  ;;  %1648 = vmatpush1.msra.mxu0 %v1583_v23  ;;  %v1574_v38 = vld [vmem:[#allocation2 + $0x58] sm:$0xff]  ;;  %v1815_v23 = vld [vmem:[%s2991_s5 + $0x10] sm:$0xff] }
 0x9e5   :  { %2159 = vmatmul.mubr.msk.f32.vlgmr.msra.gmra.mxu1 %vm358_vm1, %v1448_v39  ;;  %1649 = vmatprep.subr.mxu0 %v1580_v25  ;;  %v1571_v39 = vld [vmem:[#allocation2 + $0x40] sm:$0xff]  ;;  %v1816_v21 = vld [vmem:[%s2991_s5 + $0x18] sm:$0xff]  ;;  %v1814_v25 = vld [vmem:[%s2991_s5 + $0x8] sm:$0xff] }
 0x9e6   :  { %1768 = vmatprep.mubr.f32.mxu1 %v2318_v27  ;;  %1705 = vmatpush1.msra.mxu1 %v1625_v61  ;;  %v1567_v61 = vld [vmem:[#allocation2 + $0x20] sm:$0xff] }
 0x9e7   :  { %1706 = vmatprep.subr.mxu1 %v1622_v44  ;;  %1650 = vmatpush1.msra.mxu0 %v1579_v28  ;;  %v1564_v44 = vld [vmem:[#allocation2 + $0x8] sm:$0xff]  ;;  %v1813_v28 = vld [vmem:[%s2991_s5] sm:$0xff] }
 0x9e8   :  { %1707 = vmatpush1.msra.mxu1 %v1621_v45  ;;  %1651 = vmatprep.subr.mxu0 %v1576_v30  ;;  %v1563_v45 = vld [vmem:[#allocation2] sm:$0xff] }
 0x9e9   :  { %1708 = vmatprep.subr.mxu1 %v1618_v48  ;;  %1652 = vmatpush1.msra.mxu0 %v1575_v34 }
 0x9ea   :  { %1709 = vmatpush1.msra.mxu1 %v1617_v52  ;;  %1653 = vmatprep.subr.mxu0 %v1572_v37 }
 0x9eb   :  { %1710 = vmatprep.subr.mxu1 %v1614_v55  ;;  %1654 = vmatpush1.msra.mxu0 %v1571_v39 }
 0x9ec   :  { %1711 = vmatpush1.msra.mxu1 %v1613_v57  ;;  %1655 = vmatprep.subr.mxu0 %v1568_v41 }
 0x9ed   :  { %1712 = vmatprep.subr.mxu1 %v1610_v3  ;;  %1656 = vmatpush1.msra.mxu0 %v1567_v61  ;;  %v1828_v3 = vld [vmem:[%s2991_s5 + $0x78] sm:$0xff] }
 0x9ee   :  { %1713 = vmatpush1.msra.mxu1 %v1609_v35  ;;  %1657 = vmatprep.subr.mxu0 %v1564_v44  ;;  %v1842_v35 = vld [vmem:[%s2991_s5 + $0xe8] sm:$0xff] }
 0x9ef   :  { %1714 = vmatprep.subr.mxu1 %v1606_v6  ;;  %1658 = vmatpush1.msra.mxu0 %v1563_v45  ;;  %v1841_v6 = vld [vmem:[%s2991_s5 + $0xe0] sm:$0xff] }
 0x9f0   :  { %1715 = vmatpush1.msra.mxu1 %v1605_v8  ;;  %2029 = vmatprep.subr.mxu0 %v1844_v2  ;;  %v1840_v8 = vld [vmem:[%s2991_s5 + $0xd8] sm:$0xff] }
 0x9f1   :  { %1716 = vmatprep.subr.mxu1 %v1602_v10  ;;  %v1839_v10 = vld [vmem:[%s2991_s5 + $0xd0] sm:$0xff] }
 0x9f2   :  { %1717 = vmatpush1.msra.mxu1 %v1601_v12  ;;  %v1838_v12 = vld [vmem:[%s2991_s5 + $0xc8] sm:$0xff] }
 0x9f3   :  { %1718 = vmatprep.subr.mxu1 %v1598_v14  ;;  %v1837_v14 = vld [vmem:[%s2991_s5 + $0xc0] sm:$0xff] }
 0x9f4   :  { %1719 = vmatpush1.msra.mxu1 %v1597_v16  ;;  %v1836_v16 = vld [vmem:[%s2991_s5 + $0xb8] sm:$0xff] }
 0x9f5   :  { %1720 = vmatprep.subr.mxu1 %v1594_v18  ;;  %v1835_v18 = vld [vmem:[%s2991_s5 + $0xb0] sm:$0xff] }
 0x9f6   :  { %1721 = vmatpush1.msra.mxu1 %v1593_v50  ;;  %v1834_v50 = vld [vmem:[%s2991_s5 + $0xa8] sm:$0xff] }
 0x9f7   :  { %1722 = vmatprep.subr.mxu1 %v1590_v20  ;;  %v1833_v20 = vld [vmem:[%s2991_s5 + $0xa0] sm:$0xff] }
 0x9f8   :  { %1723 = vmatpush1.msra.mxu1 %v1589_v53  ;;  %v1832_v53 = vld [vmem:[%s2991_s5 + $0x98] sm:$0xff] }
 0x9f9   :  { %1724 = vmatprep.subr.mxu1 %v1586_v22  ;;  %v1831_v22 = vld [vmem:[%s2991_s5 + $0x90] sm:$0xff] }
 0x9fa   :  { %1725 = vmatpush1.msra.mxu1 %v1585_v24  ;;  %v1830_v24 = vld [vmem:[%s2991_s5 + $0x88] sm:$0xff] }
 0x9fb   :  { %1726 = vmatprep.subr.mxu1 %v1582_v26  ;;  %v1829_v26 = vld [vmem:[%s2991_s5 + $0x80] sm:$0xff] }
 0x9fc   :  { %1727 = vmatpush1.msra.mxu1 %v1581_v29 }
 0x9fd   :  { %1728 = vmatprep.subr.mxu1 %v1578_v31 }
 0x9fe   :  { %1729 = vmatpush1.msra.mxu1 %v1577_v32 }
 0x9ff   :  { %1730 = vmatprep.subr.mxu1 %v1574_v38 }
 0xa00   :  { %1731 = vmatpush1.msra.mxu1 %v1573_v40 }
 0xa01   :  { %1732 = vmatprep.subr.mxu1 %v1570_v42 }
 0xa02   :  { %1733 = vmatpush1.msra.mxu1 %v1569_v43 }
 0xa03   :  { %1734 = vmatprep.subr.mxu1 %v1566_v60 }
 0xa04   :  { %1735 = vmatpush1.msra.mxu1 %v1565_v46 }
 0xaa5   :  { %v2160_v33 = vpop.f32.mrf.mxu1 }
 0xaa6   :  { %v2864_v59 = vadd.f32 %v2244_v58, %v2160_v33 }
 0xaa7   :  { %v1529_v36 = vpop.f32.mrf.mxu1 }
 0xaa8   :  { %v2869_v63 = vadd.f32 %v2245_v62, %v1529_v36  ;;  %v1542_v0 = vmul.f32 %v2864_v59, %v2864_v59  ;;  %v1972_v36 = vld [vmem:[%s2993_s7] ss:$0 sm:$0xff] }
 0xaaa   :  { %1545 = vadd.xlane.f32.xlu1 %v1542_v0  ;;  %v1541_v1 = vmul.f32 %v2869_v63, %v2869_v63 }
 0xaac   :  { %1543 = vadd.xlane.f32.xlu0 %v1541_v1 }
 0xb33   :  { %v1546_v48 = vpop.xlane.xlu1 %1545 }
 0xb34   :  { %v1548_v49 = vmul.f32 0.0078125, %v1546_v48 }
 0xb35   :  { %v1544_v52 = vpop.xlane.xlu0 %1543 }
 0xb36   :  { %v1550_v54 = vadd.f32 1e-06, %v1548_v49  ;;  %v1547_v55 = vmul.f32 0.0078125, %v1544_v52 }
 0xb38   :  { %v1549_v56 = vadd.f32 1e-06, %v1547_v55  ;;  %2224 = vrsqrt.f32 %v1550_v54 }
 0xb3a   :  { %2226 = vrsqrt.f32 %v1549_v56 }
 0xb45   :  { %v2225_v57 = vpop.eup %2224 }
 0xb46   :  { %v1554_v0 = vmul.f32 %v2225_v57, %v2864_v59 }
 0xb47   :  { %v2227_v33 = vpop.eup %2226 }
 0xb48   :  { %v1553_v58 = vmul.f32 %v2227_v33, %v2869_v63  ;;  %v1562_v1 = vmul.f32 %v1972_v36, %v1554_v0 }
 0xb4a   :  { %v1561_v62 = vmul.f32 %v1972_v36, %v1553_v58 }
 0xb4c   :  { %1692 = vmatmul.mubr.f32.vlgmr.msra.gmra.mxu0 %v1561_v62  ;;  %1769 = vmatmul.mubr.f32.vlgmr.msra.gmra.mxu1 %v1561_v62 }
 0xb4d   :  { %1697 = vmatprep.mubr.f32.mxu0 %v2318_v27  ;;  %1774 = vmatprep.mubr.f32.mxu1 %v2318_v27  ;;  %v1827_v27 = vld [vmem:[%s2991_s5 + $0x70] sm:$0xff]  ;;  %s2334_s5 = smov [#allocation7]  }
 0xb4e   :  { %2030 = vmatpush3.msra.mxu0 %v1828_v3  ;;  %s1929_s19 = sshll.u32 %s2334_s5, 4  ;;  %s1930_s19 = int_to_ptr.vmem [resolvable:$true] %s1929_s19 }
 0xb4f   :  { %2031 = vmatprep.subr.mxu0 %v1843_v4  ;;  %s2286_s20 = scalar_lea.vmem %s1930_s19, 256  ;;  %p2291_p11 = scmp.lt.s32.totalorder %s1930_s19, %s1930_s19 }
 0xb50   :  { %1698 = vmatmul.mubr.f32.gmra.mxu0 %v1562_v1  ;;  %1775 = vmatmul.mubr.f32.gmra.mxu1 %v1562_v1  ;;  %p2287_p10 = scmp.ne.s32.totalorder %s1930_s19, %s2286_s20  ;;  %p2292_p12 = scmp.lt.s32.totalorder %s2286_s20, %s2286_s20 }
 0xb51   :  { %2032 = vmatpush3.msra.mxu0 %v1827_v27 }
 0xb52   :  { %2033 = vmatprep.subr.mxu0 %v1842_v35  ;;  %p2293_p13 = por %p2292_p12, %p2291_p11 }
 0xb53   :  { %2034 = vmatpush3.msra.mxu0 %v1826_v5 }
 0xb54   :  { %2035 = vmatprep.subr.mxu0 %v1841_v6  ;;  %p2294_p0 = pnand %p2293_p13, %p2287_p10 }
 0xb55   :  { %2036 = vmatpush3.msra.mxu0 %v1825_v7 }
 0xb56   :  { %2037 = vmatprep.subr.mxu0 %v1840_v8 }
 0xb57   :  { %2038 = vmatpush3.msra.mxu0 %v1824_v9 }
 0xb58   :  { %2039 = vmatprep.subr.mxu0 %v1839_v10 }
 0xb59   :  { %2040 = vmatpush3.msra.mxu0 %v1823_v11 }
 0xb5a   :  { %2041 = vmatprep.subr.mxu0 %v1838_v12 }
 0xb5b   :  { %2042 = vmatpush3.msra.mxu0 %v1822_v13 }
 0xb5c   :  { %2043 = vmatprep.subr.mxu0 %v1837_v14 }
 0xb5d   :  { %2044 = vmatpush3.msra.mxu0 %v1821_v15 }
 0xb5e   :  { %2045 = vmatprep.subr.mxu0 %v1836_v16 }
 0xb5f   :  { %2046 = vmatpush3.msra.mxu0 %v1820_v17 }
 0xb60   :  { %2047 = vmatprep.subr.mxu0 %v1835_v18 }
 0xb61   :  { %2048 = vmatpush3.msra.mxu0 %v1819_v19 }
 0xb62   :  { %2049 = vmatprep.subr.mxu0 %v1834_v50 }
 0xb63   :  { %2050 = vmatpush3.msra.mxu0 %v1818_v47 }
 0xb64   :  { %2051 = vmatprep.subr.mxu0 %v1833_v20 }
 0xb65   :  { %2052 = vmatpush3.msra.mxu0 %v1817_v51 }
 0xb66   :  { %2053 = vmatprep.subr.mxu0 %v1832_v53 }
 0xb67   :  { %2054 = vmatpush3.msra.mxu0 %v1816_v21 }
 0xb68   :  { %2055 = vmatprep.subr.mxu0 %v1831_v22 }
 0xb69   :  { %2056 = vmatpush3.msra.mxu0 %v1815_v23 }
 0xb6a   :  { %2057 = vmatprep.subr.mxu0 %v1830_v24 }
 0xb6b   :  { %2058 = vmatpush3.msra.mxu0 %v1814_v25 }
 0xb6c   :  { %2059 = vmatprep.subr.mxu0 %v1829_v26 }
 0xb6d   :  { %2060 = vmatpush3.msra.mxu0 %v1813_v28 }
 0xc0c   :  { %v1693_v29 = vpop.f32.mrf.mxu0  ;;  %v1770_v46 = vpop.f32.mrf.mxu1 }
 0xc0d   :  { %v1973_v30 = vmul.f32 -1.442695, %v1693_v29 }
 0xc0e   :  { %v1695_v31 = vpop.f32.mrf.mxu0  ;;  %v1772_v49 = vpop.f32.mrf.mxu1 }
 0xc0f   :  { %2228 = vpow2.f32 %v1973_v30  ;;  %v1974_v34 = vmul.f32 -1.442695, %v1695_v31 }
 0xc10   :  { %v1699_v32 = vpop.f32.mrf.mxu0  ;;  %v1776_v57 = vpop.f32.mrf.mxu1 }
 0xc11   :  { %2230 = vpow2.f32 %v1974_v34  ;;  %v1975_v37 = vmul.f32 -1.442695, %v1699_v32 }
 0xc12   :  { %v1701_v38 = vpop.f32.mrf.mxu0  ;;  %v1778_v1 = vpop.f32.mrf.mxu1 }
 0xc13   :  { %2232 = vpow2.f32 %v1975_v37  ;;  %v1976_v39 = vmul.f32 -1.442695, %v1701_v38 }
 0xc15   :  { %2234 = vpow2.f32 %v1976_v39 }
 0xc1c   :  { %v2229_v40 = vpop.eup %2228 }
 0xc1d   :  { %v1793_v41 = vadd.f32 1.0, %v2229_v40 }
 0xc1e   :  { %v2231_v42 = vpop.eup %2230 }
 0xc1f   :  { %2236 = vrcp.f32 %v1793_v41  ;;  %v1794_v61 = vadd.f32 1.0, %v2231_v42 }
 0xc20   :  { %v2233_v43 = vpop.eup %2232 }
 0xc21   :  { %2238 = vrcp.f32 %v1794_v61  ;;  %v1795_v44 = vadd.f32 1.0, %v2233_v43 }
 0xc22   :  { %v2235_v60 = vpop.eup %2234 }
 0xc23   :  { %2240 = vrcp.f32 %v1795_v44  ;;  %v1796_v45 = vadd.f32 1.0, %v2235_v60 }
 0xc25   :  { %2242 = vrcp.f32 %v1796_v45 }
 0xc2c   :  { %v2237_v48 = vpop.eup %2236 }
 0xc2d   :  { %v1805_v54 = vmul.f32 %v2237_v48, %v1693_v29 }
 0xc2e   :  { %v2239_v52 = vpop.eup %2238 }
 0xc2f   :  { %v1806_v55 = vmul.f32 %v2239_v52, %v1695_v31  ;;  %v1809_v36 = vmul.f32 %v1805_v54, %v1770_v46 }
 0xc30   :  { %v2241_v56 = vpop.eup %2240 }
 0xc31   :  { %v1810_v33 = vmul.f32 %v1806_v55, %v1772_v49  ;;  %v1807_v62 = vmul.f32 %v2241_v56, %v1699_v32 }
 0xc32   :  { %v2243_v58 = vpop.eup %2242 }
 0xc33   :  { %v1808_v0 = vmul.f32 %v2243_v58, %v1701_v38  ;;  %1909 = vmatprep.mubr.f32.mxu0 %v1810_v33  ;;  %v1811_v3 = vmul.f32 %v1807_v62, %v1776_v57 }
 0xc34   :  { %1910 = vmatmul.mubr.f32.vlgmr.msra.gmra.mxu0 %v1809_v36 }
 0xc35   :  { %v1812_v2 = vmul.f32 %v1808_v0, %v1778_v1 }
 0xc37   :  { %1914 = vmatprep.mubr.f32.mxu0 %v1812_v2 }
 0xc38   :  { %1915 = vmatmul.mubr.f32.gmra.mxu0 %v1811_v3 }
 0xcf4   :  { %v2061_v4 = vpop.f32.mrf.mxu0 }
 0xcf6   :  { %v2062_v27 = vpop.f32.mrf.mxu0 }
 0xcf7   :  { %v2063_v35 = vadd.f32 %v2062_v27, %v2061_v4 }
 0xcf8   :  { %v2064_v5 = vpop.f32.mrf.mxu0 }
 0xcf9   :  { %v1920_v6 = vadd.f32 %v2063_v35, %v2869_v63 }
 0xcfa   :  { %v2065_v7 = vpop.f32.mrf.mxu0 }
 0xcfb   :  { %1922 = vst [vmem:[#allocation7] sm:$0xff] %v1920_v6  ;;  %v2066_v8 = vadd.f32 %v2065_v7, %v2064_v5 }
 0xcfd   :  { %v1921_v9 = vadd.f32 %v2066_v8, %v2864_v59 }
 0xcff   :  { %1923 = vst [vmem:[#allocation7 + $0x8] sm:$0xff] %v1921_v9 }
 0xd00   :  { %2297 = shalt.err (!%p2294_p0)
}
 0xd01   :  { %1935 = dma.vmem_to_hbm [thread:$0]  %s1930_s19, 256, %s2998_s12, [#allocation4], %s2316_s13, %s2316_s13, %s2317_s14  }
 0xd02   :  { %2310 = dma.done.wait [#allocation4], 256  }
 0xd03   :  { %2311 = vsyncadd [#allocation4], 4294967040 }
 0xd04   :  { %1939 = vsyncpa [#allocation3], 1 }
 0xd05   :  { %1940 = vsyncpa [#allocation6], 1 }
 0xd06   :  { %1941 = vsyncpa [#allocation4], 1 }

</bundles_post_ra>
